<compile_context>
chip_gen: v5e
topology: v5e:2x2
jax: 0.10.0
libtpu: 0.0.40
codegen_flags: <defaults>
</compile_context>

<pallas_src>
import numpy as np

import jax
import jax.numpy as jnp
from jax.experimental import pallas as pl
from jax.experimental.pallas import tpu as pltpu

# -----------------------------------------------------------------------------
# Config (small, deterministic)
# -----------------------------------------------------------------------------
B = 2            # batch
IMG = 32         # image H = W
PATCH = 4        # patch size -> 8x8 feature grid
GH = GW = IMG // PATCH
HW = GH * GW     # 64 image-embedding pixels
D = 32           # hidden_dim == out_channels == vit dim (synthetic "in_channels")
C_EMB = 32       # SAM image-embedding channels (256 in real SAM)
NQ = 8           # num_queries
NUM_CLASSES = 3  # foreground classes; logits dim = NUM_CLASSES + 1 (background)
NC = NUM_CLASSES + 1
N_LAYERS = 3     # feature_layers = [0, 1, 2]
N_TOK = HW + (GH // 2) * (GW // 2)   # multi-scale tokens: 64 + 16 = 80
K_PATCH = 3 * PATCH * PATCH          # 48
HEAD_PAD = 128                       # lane-dense combined head: [prompt(32) | logits(4) | pad]
HW_UP = IMG * IMG                    # 1024 = 8 * 128 lanes -> lane-dense mask slab


# -----------------------------------------------------------------------------
# The single fused kernel: grid=(B,), one batch element per grid step.
# -----------------------------------------------------------------------------
def _rsprompter_kernel(x_ref, pw_ref, blkw_ref, neckw_ref, aggw_ref, bias_ref,
                       poolT_ref, pe_ref, qemb_ref, wqkv_ref, wh_ref, bh_ref, wup_ref,
                       head_ref, mask_ref):
    x = x_ref[0]                                          # (HW, 3*P*P)
    biases = bias_ref[...]                                # (6, D)
    blkw = blkw_ref[...]                                  # (L, D, D)
    aggw = aggw_ref[...]                                  # (L, D, D)

    # ---- synthetic encoder: patch embed + GELU ----
    feat = jax.nn.gelu(
        jnp.dot(x, pw_ref[...], preferred_element_type=jnp.float32) + biases[0:1, :])

    # ---- residual MLP blocks; FeatureAggregator accumulated as per-layer matmuls ----
    agg = jnp.zeros((HW, D), jnp.float32)
    for l in range(N_LAYERS):
        h = jnp.dot(feat, blkw[l], preferred_element_type=jnp.float32) + biases[1 + l:2 + l, :]
        feat = feat + jax.nn.gelu(h)                      # hooked intermediate l
        agg = agg + jnp.dot(feat, aggw[l], preferred_element_type=jnp.float32)

    # ---- SAM neck (no activation) on last hooked feature -> image embeddings (token-major) ----
    img_tok = (jnp.dot(feat, neckw_ref[...], preferred_element_type=jnp.float32)
               + biases[4:5, :])                          # (HW, C_EMB)

    # ---- FeatureAggregator bias + ReLU ----
    agg = jnp.maximum(agg + biases[5:6, :], 0.0)          # (HW, D)

    # ---- MultiScaleGenerator: [identity ; 2x2 avg-pool] as one precomputed matmul ----
    tokens = jnp.dot(poolT_ref[...], agg, preferred_element_type=jnp.float32)   # (N_TOK, D)

    # ---- QueryPrompter cross-attention (queries attend to multi-scale tokens) ----
    q_emb = qemb_ref[...]                                 # (Q, D)
    wqkv = wqkv_ref[...]                                  # (3, D, D)
    q = jnp.dot(q_emb, wqkv[0], preferred_element_type=jnp.float32)              # (Q, D)
    k = jnp.dot(tokens, wqkv[1], preferred_element_type=jnp.float32)             # (N, D)
    v = jnp.dot(tokens, wqkv[2], preferred_element_type=jnp.float32)             # (N, D)

    scale = float(D) ** -0.5
    s = jax.lax.dot_general(q, k, (((1,), (1,)), ((), ())),
                            preferred_element_type=jnp.float32) * scale          # (Q, N)
    m = jnp.max(s, axis=-1, keepdims=True)
    p = jnp.exp(s - m)
    denom = jnp.sum(p, axis=-1, keepdims=True)
    inv = pl.reciprocal(denom, approx=True)               # EUP slot, not a VALU divide
    attn = jnp.dot(p, v, preferred_element_type=jnp.float32) * inv               # (Q, D)
    qf = q_emb + attn                                     # residual (unprojected, as before)

    # ---- packed lane-dense head: [prompt(0:C_EMB) | logits(C_EMB:C_EMB+NC) | zero pad] ----
    head = (jnp.dot(qf, wh_ref[...], preferred_element_type=jnp.float32)
            + bh_ref[...])                                # (Q, 128)
    head_ref[0] = head.astype(head_ref.dtype)

    # ---- SAM-style mask decode: prompt . (image_embedding + dense_pe), token-major ----
    prompt = head[:, :C_EMB]                              # lane offset 0 slice
    src_tok = img_tok + pe_ref[...]                       # (HW, C_EMB)
    masks_low = jax.lax.dot_general(prompt, src_tok, (((1,), (1,)), ((), ())),
                                    preferred_element_type=jnp.float32)          # (Q, HW)

    # ---- 4x bilinear upsample (postprocess_masks) as one matmul: kron(U,U)^T ----
    masks_up = jnp.dot(masks_low, wup_ref[...], preferred_element_type=jnp.float32)  # (Q, 1024)

    # ---- instance / memory_efficient: zero masks of background queries ----
    # argmax(logits) < NC-1  <=>  max(fg logits) >= bg logit (first-occurrence tie semantics)
    fg_max = jnp.max(head[:, C_EMB:C_EMB + NC - 1], axis=-1, keepdims=True)
    bg = head[:, C_EMB + NC - 1:C_EMB + NC]
    fg = (fg_max >= bg).astype(jnp.float32)               # (Q, 1)
    mask_ref[0] = (masks_up * fg).astype(mask_ref.dtype)


def pallas_rsprompter(x_tok, params):
    Bn = x_tok.shape[0]
    return pl.pallas_call(
        _rsprompter_kernel,
        out_shape=(jax.ShapeDtypeStruct((Bn, NQ, HEAD_PAD), jnp.float32),
                   jax.ShapeDtypeStruct((Bn, NQ, HW_UP), jnp.float32)),
        grid=(Bn,),
        in_specs=[
            pl.BlockSpec((1, HW, K_PATCH), lambda b: (b, 0, 0)),       # patchified tokens
            pl.BlockSpec((K_PATCH, D), lambda b: (0, 0)),              # patch_w
            pl.BlockSpec((N_LAYERS, D, D), lambda b: (0, 0, 0)),       # blk_w
            pl.BlockSpec((D, C_EMB), lambda b: (0, 0)),                # neck_w
            pl.BlockSpec((N_LAYERS, D, D), lambda b: (0, 0, 0)),       # agg_w (per-layer slabs)
            pl.BlockSpec((6, D), lambda b: (0, 0)),                    # packed biases
            pl.BlockSpec((N_TOK, HW), lambda b: (0, 0)),               # [I ; pool] matrix
            pl.BlockSpec((HW, C_EMB), lambda b: (0, 0)),               # dense_pe (token-major)
            pl.BlockSpec((NQ, D), lambda b: (0, 0)),                   # query embeddings
            pl.BlockSpec((3, D, D), lambda b: (0, 0, 0)),              # wq/wk/wv stacked
            pl.BlockSpec((D, HEAD_PAD), lambda b: (0, 0)),             # packed head weight
            pl.BlockSpec((1, HEAD_PAD), lambda b: (0, 0)),             # packed head bias
            pl.BlockSpec((HW, HW_UP), lambda b: (0, 0)),               # bilinear kron(U,U)^T
        ],
        out_specs=(
            pl.BlockSpec((1, NQ, HEAD_PAD), lambda b: (b, 0, 0)),
            pl.BlockSpec((1, NQ, HW_UP), lambda b: (b, 0, 0)),
        ),
        # NOTE: on v7x a real dual-TC split would need CORE_PARALLEL / core_map; plain
        # "parallel" on the batch axis is kept here for portability (near-zero cost).
        compiler_params=pltpu.CompilerParams(dimension_semantics=("parallel",)),
    )(x_tok, params["patch_w"], params["blk_w"], params["neck_w"], params["agg_w"],
      params["biases"], params["pool_T"], params["dense_pe_t"], params["query_emb"],
      params["wqkv"], params["w_head"], params["b_head"], params["w_up"])


# -----------------------------------------------------------------------------
# Deterministic parameter init (all packed / constant matrices computed once here)
# -----------------------------------------------------------------------------
def make_dense_pe(C, H, W):
    """Deterministic sinusoidal dense positional encoding, token-major (H*W, C)."""
    yy, xx = jnp.meshgrid(jnp.arange(H), jnp.arange(W), indexing="ij")
    pos = jnp.stack([yy, xx], axis=-1).astype(jnp.float32) / jnp.float32(max(H, W))
    freqs = jnp.arange(C // 4, dtype=jnp.float32) + 1.0
    ang = pos[..., :, None] * freqs[None, None, None, :] * jnp.pi      # (H, W, 2, C/4)
    pe = jnp.concatenate([jnp.sin(ang), jnp.cos(ang)], axis=-1)        # (H, W, 2, C/2)
    return pe.reshape(H * W, C)


def make_pool_matrix(gh, gw):
    """(N_TOK, HW) matrix = [identity ; 2x2 average-pool rows]."""
    hw = gh * gw
    ph, pw = gh // 2, gw // 2
    T = np.zeros((hw + ph * pw, hw), np.float32)
    T[:hw, :] = np.eye(hw, dtype=np.float32)
    for pi in range(ph):
        for pj in range(pw):
            r = hw + pi * pw + pj
            for di in range(2):
                for dj in range(2):
                    T[r, (2 * pi + di) * gw + (2 * pj + dj)] = 0.25
    return jnp.asarray(T)


def make_upsample_matrix(src, dst):
    """Separable bilinear (half-pixel centers) upsample as a single (src*src, dst*dst) matrix."""
    U = np.zeros((dst, src), np.float32)
    scale = src / dst
    for i in range(dst):
        s = (i + 0.5) * scale - 0.5
        i0 = int(np.floor(s))
        f = s - i0
        U[i, min(max(i0, 0), src - 1)] += 1.0 - f
        U[i, min(max(i0 + 1, 0), src - 1)] += f
    W = np.kron(U, U)                         # (dst*dst, src*src)
    return jnp.asarray(W.T)                   # (src*src, dst*dst)


def init_params(key):
    ks = jax.random.split(key, 16)
    p = {}
    p["patch_w"] = 0.1 * jax.random.normal(ks[0], (K_PATCH, D), jnp.float32)
    patch_b = jnp.zeros((D,), jnp.float32)

    blk_w, blk_b = [], []
    for l in range(N_LAYERS):
        blk_w.append(0.1 * jax.random.normal(ks[1 + l], (D, D), jnp.float32))
        blk_b.append(jnp.zeros((D,), jnp.float32))
    p["blk_w"] = jnp.stack(blk_w, axis=0)                                # (L, D, D)

    p["neck_w"] = 0.1 * jax.random.normal(ks[5], (D, C_EMB), jnp.float32)
    neck_b = jnp.zeros((C_EMB,), jnp.float32)

    # aggregator weight stored as per-layer (L, D, D) slabs: sum_l inters[l] @ agg_w[l]
    # is mathematically identical to concat(inters) @ (L*D, D).
    agg_w_cat = 0.1 * jax.random.normal(ks[6], (N_LAYERS * D, D), jnp.float32)
    p["agg_w"] = agg_w_cat.reshape(N_LAYERS, D, D)
    agg_b = jnp.zeros((D,), jnp.float32)

    # all encoder biases packed into one small (6, D) input
    p["biases"] = jnp.stack([patch_b] + blk_b + [neck_b, agg_b], axis=0)

    p["query_emb"] = 0.1 * jax.random.normal(ks[7], (NQ, D), jnp.float32)
    wq = 0.1 * jax.random.normal(ks[8], (D, D), jnp.float32)
    wk = 0.1 * jax.random.normal(ks[9], (D, D), jnp.float32)
    wv = 0.1 * jax.random.normal(ks[10], (D, D), jnp.float32)
    p["wqkv"] = jnp.stack([wq, wk, wv], axis=0)                          # (3, D, D)

    wc = 0.1 * jax.random.normal(ks[11], (D, NC), jnp.float32)
    bc = jnp.zeros((NC,), jnp.float32)
    wp = 0.1 * jax.random.normal(ks[12], (D, C_EMB), jnp.float32)
    bp = jnp.zeros((C_EMB,), jnp.float32)

    # packed, lane-dense [prompt | logits | pad] head
    w_head = jnp.zeros((D, HEAD_PAD), jnp.float32)
    w_head = w_head.at[:, :C_EMB].set(wp).at[:, C_EMB:C_EMB + NC].set(wc)
    p["w_head"] = w_head
    b_head = jnp.zeros((1, HEAD_PAD), jnp.float32)
    b_head = b_head.at[0, :C_EMB].set(bp).at[0, C_EMB:C_EMB + NC].set(bc)
    p["b_head"] = b_head

    # constant matrices precomputed once
    p["dense_pe_t"] = make_dense_pe(C_EMB, GH, GW)                       # (HW, C_EMB)
    p["pool_T"] = make_pool_matrix(GH, GW)                               # (N_TOK, HW)
    p["w_up"] = make_upsample_matrix(GH, IMG)                            # (HW, IMG*IMG)
    return p


# -----------------------------------------------------------------------------
# Full (simplified) RSPrompter forward
# -----------------------------------------------------------------------------
@jax.jit
def _forward_core(params, images):
    Bn = images.shape[0]
    orig_h, orig_w = images.shape[-2], images.shape[-1]

    # patchify NCHW -> (B, HW, 3*PATCH*PATCH); everything else happens inside the kernel
    x = images.reshape(Bn, 3, GH, PATCH, GW, PATCH).transpose(0, 2, 4, 1, 3, 5)
    x = x.reshape(Bn, GH * GW, K_PATCH)

    head_out, masks_up = pallas_rsprompter(x, params)

    prompt_embeddings = head_out[:, :, :C_EMB]                           # (B, Q, C_EMB)
    class_logits = head_out[:, :, C_EMB:C_EMB + NC]                      # (B, Q, NC)
    pred_masks = masks_up.reshape(Bn, NQ, 1, orig_h, orig_w)             # (B, Q, 1, H, W)
    return class_logits, pred_masks, prompt_embeddings


def rsprompter_forward(params, images):
    """images: [B, 3, H, W] (NCHW, like the PyTorch module)."""
    class_logits, pred_masks, prompt_embeddings = _forward_core(params, images)
    return {
        "pred_logits": class_logits,
        "pred_masks": pred_masks,
        "prompt_embeddings": prompt_embeddings,
        "coarse_masks": None,          # use_coarse_mask=False path
        "segmentation_type": "instance",
    }


# -----------------------------------------------------------------------------
if __name__ == "__main__":
    key = jax.random.PRNGKey(0)
    pkey, ikey = jax.random.split(key)
    params = init_params(pkey)
    images = jax.random.normal(ikey, (B, 3, IMG, IMG), jnp.float32)

    out = rsprompter_forward(params, images)
    jax.block_until_ready(out["pred_masks"])

    assert out["pred_logits"].shape == (B, NQ, NC)
    assert out["pred_masks"].shape == (B, NQ, 1, IMG, IMG)
    assert out["prompt_embeddings"].shape == (B, NQ, C_EMB)
    print("KERNEL_OK")
</pallas_src>

<mosaic_0001>
module attributes {stable_mosaic.version = 11 : i64} {
  func.func @_rsprompter_kernel(%arg0: i32, %arg1: memref<1x64x48xf32, #tpu.memory_space<vmem>>, %arg2: memref<48x32xf32, #tpu.memory_space<vmem>>, %arg3: memref<3x32x32xf32, #tpu.memory_space<vmem>>, %arg4: memref<32x32xf32, #tpu.memory_space<vmem>>, %arg5: memref<3x32x32xf32, #tpu.memory_space<vmem>>, %arg6: memref<6x32xf32, #tpu.memory_space<vmem>>, %arg7: memref<80x64xf32, #tpu.memory_space<vmem>>, %arg8: memref<64x32xf32, #tpu.memory_space<vmem>>, %arg9: memref<8x32xf32, #tpu.memory_space<vmem>>, %arg10: memref<3x32x32xf32, #tpu.memory_space<vmem>>, %arg11: memref<32x128xf32, #tpu.memory_space<vmem>>, %arg12: memref<1x128xf32, #tpu.memory_space<vmem>>, %arg13: memref<64x1024xf32, #tpu.memory_space<vmem>>, %arg14: memref<1x8x128xf32, #tpu.memory_space<vmem>>, %arg15: memref<1x8x1024xf32, #tpu.memory_space<vmem>>) attributes {dimension_semantics = [#tpu.dimension_semantics<parallel>], iteration_bounds = array<i64: 2>, scalar_prefetch = 0 : i64, scratch_operands = 0 : i64, tpu.core_type = #tpu.core_type<tc>, window_params = [{transform_indices = @transform_0, window_bounds = array<i64: 1, 64, 48>}, {pipeline_mode = #tpu.pipeline_mode<synchronous>, transform_indices = @transform_1, window_bounds = array<i64: 48, 32>}, {pipeline_mode = #tpu.pipeline_mode<synchronous>, transform_indices = @transform_2, window_bounds = array<i64: 3, 32, 32>}, {pipeline_mode = #tpu.pipeline_mode<synchronous>, transform_indices = @transform_3, window_bounds = array<i64: 32, 32>}, {pipeline_mode = #tpu.pipeline_mode<synchronous>, transform_indices = @transform_4, window_bounds = array<i64: 3, 32, 32>}, {pipeline_mode = #tpu.pipeline_mode<synchronous>, transform_indices = @transform_5, window_bounds = array<i64: 6, 32>}, {pipeline_mode = #tpu.pipeline_mode<synchronous>, transform_indices = @transform_6, window_bounds = array<i64: 80, 64>}, {pipeline_mode = #tpu.pipeline_mode<synchronous>, transform_indices = @transform_7, window_bounds = array<i64: 64, 32>}, {pipeline_mode = #tpu.pipeline_mode<synchronous>, transform_indices = @transform_8, window_bounds = array<i64: 8, 32>}, {pipeline_mode = #tpu.pipeline_mode<synchronous>, transform_indices = @transform_9, window_bounds = array<i64: 3, 32, 32>}, {pipeline_mode = #tpu.pipeline_mode<synchronous>, transform_indices = @transform_10, window_bounds = array<i64: 32, 128>}, {pipeline_mode = #tpu.pipeline_mode<synchronous>, transform_indices = @transform_11, window_bounds = array<i64: 1, 128>}, {pipeline_mode = #tpu.pipeline_mode<synchronous>, transform_indices = @transform_12, window_bounds = array<i64: 64, 1024>}, {transform_indices = @transform_13, window_bounds = array<i64: 1, 8, 128>}, {transform_indices = @transform_14, window_bounds = array<i64: 1, 8, 1024>}]} {
    %c0 = arith.constant 0 : index
    %c0_0 = arith.constant 0 : index
    %c0_1 = arith.constant 0 : index
    %0 = vector.load %arg1[%c0, %c0_0, %c0_1] : memref<1x64x48xf32, #tpu.memory_space<vmem>>, vector<1x64x48xf32>
    %1 = vector.shape_cast %0 : vector<1x64x48xf32> to vector<64x48xf32>
    %c0_2 = arith.constant 0 : index
    %c0_3 = arith.constant 0 : index
    %2 = vector.load %arg6[%c0_2, %c0_3] : memref<6x32xf32, #tpu.memory_space<vmem>>, vector<6x32xf32>
    %c0_4 = arith.constant 0 : index
    %c0_5 = arith.constant 0 : index
    %c0_6 = arith.constant 0 : index
    %3 = vector.load %arg3[%c0_4, %c0_5, %c0_6] : memref<3x32x32xf32, #tpu.memory_space<vmem>>, vector<3x32x32xf32>
    %c0_7 = arith.constant 0 : index
    %c0_8 = arith.constant 0 : index
    %c0_9 = arith.constant 0 : index
    %4 = vector.load %arg5[%c0_7, %c0_8, %c0_9] : memref<3x32x32xf32, #tpu.memory_space<vmem>>, vector<3x32x32xf32>
    %c0_10 = arith.constant 0 : index
    %c0_11 = arith.constant 0 : index
    %5 = vector.load %arg2[%c0_10, %c0_11] : memref<48x32xf32, #tpu.memory_space<vmem>>, vector<48x32xf32>
    %cst = arith.constant dense<0.000000e+00> : vector<64x32xf32>
    %6 = tpu.matmul %1, %5, %cst {dimension_numbers = #tpu.dot_dimension_numbers<[1], [0], [0], [1], [0, 0, 1, 1], [], []>} : vector<64x48xf32>, vector<48x32xf32>, vector<64x32xf32> -> vector<64x32xf32>
    %7 = vector.extract_strided_slice %2 {offsets = [0, 0], sizes = [1, 32], strides = [1, 1]} : vector<6x32xf32> to vector<1x32xf32>
    %8 = vector.broadcast %7 : vector<1x32xf32> to vector<64x32xf32>
    %9 = arith.addf %6, %8 : vector<64x32xf32>
    %10 = arith.mulf %9, %9 : vector<64x32xf32>
    %11 = arith.mulf %9, %10 : vector<64x32xf32>
    %cst_12 = arith.constant 4.471500e-02 : f32
    %12 = vector.broadcast %cst_12 : f32 to vector<64x32xf32>
    %13 = arith.mulf %12, %11 : vector<64x32xf32>
    %14 = arith.addf %9, %13 : vector<64x32xf32>
    %cst_13 = arith.constant 0.797884583 : f32
    %15 = vector.broadcast %cst_13 : f32 to vector<64x32xf32>
    %16 = arith.mulf %15, %14 : vector<64x32xf32>
    %17 = math.tanh %16 : vector<64x32xf32>
    %cst_14 = arith.constant 1.000000e+00 : f32
    %18 = vector.broadcast %cst_14 : f32 to vector<64x32xf32>
    %19 = arith.addf %18, %17 : vector<64x32xf32>
    %cst_15 = arith.constant 5.000000e-01 : f32
    %20 = vector.broadcast %cst_15 : f32 to vector<64x32xf32>
    %21 = arith.mulf %20, %19 : vector<64x32xf32>
    %22 = arith.mulf %9, %21 : vector<64x32xf32>
    %cst_16 = arith.constant 0.000000e+00 : f32
    %23 = vector.broadcast %cst_16 : f32 to vector<64x32xf32>
    %24 = vector.extract_strided_slice %3 {offsets = [0, 0, 0], sizes = [1, 32, 32], strides = [1, 1, 1]} : vector<3x32x32xf32> to vector<1x32x32xf32>
    %25 = vector.shape_cast %24 : vector<1x32x32xf32> to vector<32x32xf32>
    %cst_17 = arith.constant dense<0.000000e+00> : vector<64x32xf32>
    %26 = tpu.matmul %22, %25, %cst_17 {dimension_numbers = #tpu.dot_dimension_numbers<[1], [0], [0], [1], [0, 0, 1, 1], [], []>} : vector<64x32xf32>, vector<32x32xf32>, vector<64x32xf32> -> vector<64x32xf32>
    %27 = vector.extract_strided_slice %2 {offsets = [1, 0], sizes = [1, 32], strides = [1, 1]} : vector<6x32xf32> to vector<1x32xf32>
    %28 = vector.broadcast %27 : vector<1x32xf32> to vector<64x32xf32>
    %29 = arith.addf %26, %28 : vector<64x32xf32>
    %30 = arith.mulf %29, %29 : vector<64x32xf32>
    %31 = arith.mulf %29, %30 : vector<64x32xf32>
    %cst_18 = arith.constant 4.471500e-02 : f32
    %32 = vector.broadcast %cst_18 : f32 to vector<64x32xf32>
    %33 = arith.mulf %32, %31 : vector<64x32xf32>
    %34 = arith.addf %29, %33 : vector<64x32xf32>
    %cst_19 = arith.constant 0.797884583 : f32
    %35 = vector.broadcast %cst_19 : f32 to vector<64x32xf32>
    %36 = arith.mulf %35, %34 : vector<64x32xf32>
    %37 = math.tanh %36 : vector<64x32xf32>
    %cst_20 = arith.constant 1.000000e+00 : f32
    %38 = vector.broadcast %cst_20 : f32 to vector<64x32xf32>
    %39 = arith.addf %38, %37 : vector<64x32xf32>
    %cst_21 = arith.constant 5.000000e-01 : f32
    %40 = vector.broadcast %cst_21 : f32 to vector<64x32xf32>
    %41 = arith.mulf %40, %39 : vector<64x32xf32>
    %42 = arith.mulf %29, %41 : vector<64x32xf32>
    %43 = arith.addf %22, %42 : vector<64x32xf32>
    %44 = vector.extract_strided_slice %4 {offsets = [0, 0, 0], sizes = [1, 32, 32], strides = [1, 1, 1]} : vector<3x32x32xf32> to vector<1x32x32xf32>
    %45 = vector.shape_cast %44 : vector<1x32x32xf32> to vector<32x32xf32>
    %cst_22 = arith.constant dense<0.000000e+00> : vector<64x32xf32>
    %46 = tpu.matmul %43, %45, %cst_22 {dimension_numbers = #tpu.dot_dimension_numbers<[1], [0], [0], [1], [0, 0, 1, 1], [], []>} : vector<64x32xf32>, vector<32x32xf32>, vector<64x32xf32> -> vector<64x32xf32>
    %47 = arith.addf %23, %46 : vector<64x32xf32>
    %48 = vector.extract_strided_slice %3 {offsets = [1, 0, 0], sizes = [1, 32, 32], strides = [1, 1, 1]} : vector<3x32x32xf32> to vector<1x32x32xf32>
    %49 = vector.shape_cast %48 : vector<1x32x32xf32> to vector<32x32xf32>
    %cst_23 = arith.constant dense<0.000000e+00> : vector<64x32xf32>
    %50 = tpu.matmul %43, %49, %cst_23 {dimension_numbers = #tpu.dot_dimension_numbers<[1], [0], [0], [1], [0, 0, 1, 1], [], []>} : vector<64x32xf32>, vector<32x32xf32>, vector<64x32xf32> -> vector<64x32xf32>
    %51 = vector.extract_strided_slice %2 {offsets = [2, 0], sizes = [1, 32], strides = [1, 1]} : vector<6x32xf32> to vector<1x32xf32>
    %52 = vector.broadcast %51 : vector<1x32xf32> to vector<64x32xf32>
    %53 = arith.addf %50, %52 : vector<64x32xf32>
    %54 = arith.mulf %53, %53 : vector<64x32xf32>
    %55 = arith.mulf %53, %54 : vector<64x32xf32>
    %cst_24 = arith.constant 4.471500e-02 : f32
    %56 = vector.broadcast %cst_24 : f32 to vector<64x32xf32>
    %57 = arith.mulf %56, %55 : vector<64x32xf32>
    %58 = arith.addf %53, %57 : vector<64x32xf32>
    %cst_25 = arith.constant 0.797884583 : f32
    %59 = vector.broadcast %cst_25 : f32 to vector<64x32xf32>
    %60 = arith.mulf %59, %58 : vector<64x32xf32>
    %61 = math.tanh %60 : vector<64x32xf32>
    %cst_26 = arith.constant 1.000000e+00 : f32
    %62 = vector.broadcast %cst_26 : f32 to vector<64x32xf32>
    %63 = arith.addf %62, %61 : vector<64x32xf32>
    %cst_27 = arith.constant 5.000000e-01 : f32
    %64 = vector.broadcast %cst_27 : f32 to vector<64x32xf32>
    %65 = arith.mulf %64, %63 : vector<64x32xf32>
    %66 = arith.mulf %53, %65 : vector<64x32xf32>
    %67 = arith.addf %43, %66 : vector<64x32xf32>
    %68 = vector.extract_strided_slice %4 {offsets = [1, 0, 0], sizes = [1, 32, 32], strides = [1, 1, 1]} : vector<3x32x32xf32> to vector<1x32x32xf32>
    %69 = vector.shape_cast %68 : vector<1x32x32xf32> to vector<32x32xf32>
    %cst_28 = arith.constant dense<0.000000e+00> : vector<64x32xf32>
    %70 = tpu.matmul %67, %69, %cst_28 {dimension_numbers = #tpu.dot_dimension_numbers<[1], [0], [0], [1], [0, 0, 1, 1], [], []>} : vector<64x32xf32>, vector<32x32xf32>, vector<64x32xf32> -> vector<64x32xf32>
    %71 = arith.addf %47, %70 : vector<64x32xf32>
    %72 = vector.extract_strided_slice %3 {offsets = [2, 0, 0], sizes = [1, 32, 32], strides = [1, 1, 1]} : vector<3x32x32xf32> to vector<1x32x32xf32>
    %73 = vector.shape_cast %72 : vector<1x32x32xf32> to vector<32x32xf32>
    %cst_29 = arith.constant dense<0.000000e+00> : vector<64x32xf32>
    %74 = tpu.matmul %67, %73, %cst_29 {dimension_numbers = #tpu.dot_dimension_numbers<[1], [0], [0], [1], [0, 0, 1, 1], [], []>} : vector<64x32xf32>, vector<32x32xf32>, vector<64x32xf32> -> vector<64x32xf32>
    %75 = vector.extract_strided_slice %2 {offsets = [3, 0], sizes = [1, 32], strides = [1, 1]} : vector<6x32xf32> to vector<1x32xf32>
    %76 = vector.broadcast %75 : vector<1x32xf32> to vector<64x32xf32>
    %77 = arith.addf %74, %76 : vector<64x32xf32>
    %78 = arith.mulf %77, %77 : vector<64x32xf32>
    %79 = arith.mulf %77, %78 : vector<64x32xf32>
    %cst_30 = arith.constant 4.471500e-02 : f32
    %80 = vector.broadcast %cst_30 : f32 to vector<64x32xf32>
    %81 = arith.mulf %80, %79 : vector<64x32xf32>
    %82 = arith.addf %77, %81 : vector<64x32xf32>
    %cst_31 = arith.constant 0.797884583 : f32
    %83 = vector.broadcast %cst_31 : f32 to vector<64x32xf32>
    %84 = arith.mulf %83, %82 : vector<64x32xf32>
    %85 = math.tanh %84 : vector<64x32xf32>
    %cst_32 = arith.constant 1.000000e+00 : f32
    %86 = vector.broadcast %cst_32 : f32 to vector<64x32xf32>
    %87 = arith.addf %86, %85 : vector<64x32xf32>
    %cst_33 = arith.constant 5.000000e-01 : f32
    %88 = vector.broadcast %cst_33 : f32 to vector<64x32xf32>
    %89 = arith.mulf %88, %87 : vector<64x32xf32>
    %90 = arith.mulf %77, %89 : vector<64x32xf32>
    %91 = arith.addf %67, %90 : vector<64x32xf32>
    %92 = vector.extract_strided_slice %4 {offsets = [2, 0, 0], sizes = [1, 32, 32], strides = [1, 1, 1]} : vector<3x32x32xf32> to vector<1x32x32xf32>
    %93 = vector.shape_cast %92 : vector<1x32x32xf32> to vector<32x32xf32>
    %cst_34 = arith.constant dense<0.000000e+00> : vector<64x32xf32>
    %94 = tpu.matmul %91, %93, %cst_34 {dimension_numbers = #tpu.dot_dimension_numbers<[1], [0], [0], [1], [0, 0, 1, 1], [], []>} : vector<64x32xf32>, vector<32x32xf32>, vector<64x32xf32> -> vector<64x32xf32>
    %95 = arith.addf %71, %94 : vector<64x32xf32>
    %c0_35 = arith.constant 0 : index
    %c0_36 = arith.constant 0 : index
    %96 = vector.load %arg4[%c0_35, %c0_36] : memref<32x32xf32, #tpu.memory_space<vmem>>, vector<32x32xf32>
    %cst_37 = arith.constant dense<0.000000e+00> : vector<64x32xf32>
    %97 = tpu.matmul %91, %96, %cst_37 {dimension_numbers = #tpu.dot_dimension_numbers<[1], [0], [0], [1], [0, 0, 1, 1], [], []>} : vector<64x32xf32>, vector<32x32xf32>, vector<64x32xf32> -> vector<64x32xf32>
    %98 = vector.extract_strided_slice %2 {offsets = [4, 0], sizes = [1, 32], strides = [1, 1]} : vector<6x32xf32> to vector<1x32xf32>
    %99 = vector.broadcast %98 : vector<1x32xf32> to vector<64x32xf32>
    %100 = arith.addf %97, %99 : vector<64x32xf32>
    %101 = vector.extract_strided_slice %2 {offsets = [5, 0], sizes = [1, 32], strides = [1, 1]} : vector<6x32xf32> to vector<1x32xf32>
    %102 = vector.broadcast %101 : vector<1x32xf32> to vector<64x32xf32>
    %103 = arith.addf %95, %102 : vector<64x32xf32>
    %cst_38 = arith.constant 0.000000e+00 : f32
    %104 = vector.broadcast %cst_38 : f32 to vector<64x32xf32>
    %105 = arith.maximumf %103, %104 : vector<64x32xf32>
    %c0_39 = arith.constant 0 : index
    %c0_40 = arith.constant 0 : index
    %106 = vector.load %arg7[%c0_39, %c0_40] : memref<80x64xf32, #tpu.memory_space<vmem>>, vector<80x64xf32>
    %cst_41 = arith.constant dense<0.000000e+00> : vector<80x32xf32>
    %107 = tpu.matmul %106, %105, %cst_41 {dimension_numbers = #tpu.dot_dimension_numbers<[1], [0], [0], [1], [0, 0, 1, 1], [], []>} : vector<80x64xf32>, vector<64x32xf32>, vector<80x32xf32> -> vector<80x32xf32>
    %c0_42 = arith.constant 0 : index
    %c0_43 = arith.constant 0 : index
    %108 = vector.load %arg9[%c0_42, %c0_43] : memref<8x32xf32, #tpu.memory_space<vmem>>, vector<8x32xf32>
    %c0_44 = arith.constant 0 : index
    %c0_45 = arith.constant 0 : index
    %c0_46 = arith.constant 0 : index
    %109 = vector.load %arg10[%c0_44, %c0_45, %c0_46] : memref<3x32x32xf32, #tpu.memory_space<vmem>>, vector<3x32x32xf32>
    %110 = vector.extract_strided_slice %109 {offsets = [0, 0, 0], sizes = [1, 32, 32], strides = [1, 1, 1]} : vector<3x32x32xf32> to vector<1x32x32xf32>
    %111 = vector.shape_cast %110 : vector<1x32x32xf32> to vector<32x32xf32>
    %cst_47 = arith.constant dense<0.000000e+00> : vector<8x32xf32>
    %112 = tpu.matmul %108, %111, %cst_47 {dimension_numbers = #tpu.dot_dimension_numbers<[1], [0], [0], [1], [0, 0, 1, 1], [], []>} : vector<8x32xf32>, vector<32x32xf32>, vector<8x32xf32> -> vector<8x32xf32>
    %113 = vector.extract_strided_slice %109 {offsets = [1, 0, 0], sizes = [1, 32, 32], strides = [1, 1, 1]} : vector<3x32x32xf32> to vector<1x32x32xf32>
    %114 = vector.shape_cast %113 : vector<1x32x32xf32> to vector<32x32xf32>
    %cst_48 = arith.constant dense<0.000000e+00> : vector<80x32xf32>
    %115 = tpu.matmul %107, %114, %cst_48 {dimension_numbers = #tpu.dot_dimension_numbers<[1], [0], [0], [1], [0, 0, 1, 1], [], []>} : vector<80x32xf32>, vector<32x32xf32>, vector<80x32xf32> -> vector<80x32xf32>
    %116 = vector.extract_strided_slice %109 {offsets = [2, 0, 0], sizes = [1, 32, 32], strides = [1, 1, 1]} : vector<3x32x32xf32> to vector<1x32x32xf32>
    %117 = vector.shape_cast %116 : vector<1x32x32xf32> to vector<32x32xf32>
    %cst_49 = arith.constant dense<0.000000e+00> : vector<80x32xf32>
    %118 = tpu.matmul %107, %117, %cst_49 {dimension_numbers = #tpu.dot_dimension_numbers<[1], [0], [0], [1], [0, 0, 1, 1], [], []>} : vector<80x32xf32>, vector<32x32xf32>, vector<80x32xf32> -> vector<80x32xf32>
    %cst_50 = arith.constant dense<0.000000e+00> : vector<8x80xf32>
    %119 = tpu.matmul %112, %115, %cst_50 {dimension_numbers = #tpu.dot_dimension_numbers<[1], [1], [0], [0], [0, 0, 1, 0], [], []>} : vector<8x32xf32>, vector<80x32xf32>, vector<8x80xf32> -> vector<8x80xf32>
    %cst_51 = arith.constant 0.176776692 : f32
    %120 = vector.broadcast %cst_51 : f32 to vector<8x80xf32>
    %121 = arith.mulf %119, %120 : vector<8x80xf32>
    %cst_52 = arith.constant dense<0xFF800000> : vector<8xf32>
    %122 = vector.multi_reduction <maximumf>, %121, %cst_52 [1] : vector<8x80xf32> to vector<8xf32>
    %123 = vector.shape_cast %122 : vector<8xf32> to vector<8x1xf32>
    %124 = vector.broadcast %123 : vector<8x1xf32> to vector<8x80xf32>
    %125 = arith.subf %121, %124 : vector<8x80xf32>
    %126 = math.exp %125 : vector<8x80xf32>
    %cst_53 = arith.constant dense<0.000000e+00> : vector<8xf32>
    %127 = vector.multi_reduction <add>, %126, %cst_53 [1] : vector<8x80xf32> to vector<8xf32>
    %128 = vector.shape_cast %127 : vector<8xf32> to vector<8x1xf32>
    %129 = tpu.reciprocal %128 {approx = true} : vector<8x1xf32> -> vector<8x1xf32>
    %cst_54 = arith.constant dense<0.000000e+00> : vector<8x32xf32>
    %130 = tpu.matmul %126, %118, %cst_54 {dimension_numbers = #tpu.dot_dimension_numbers<[1], [0], [0], [1], [0, 0, 1, 1], [], []>} : vector<8x80xf32>, vector<80x32xf32>, vector<8x32xf32> -> vector<8x32xf32>
    %131 = vector.broadcast %129 : vector<8x1xf32> to vector<8x32xf32>
    %132 = arith.mulf %130, %131 : vector<8x32xf32>
    %133 = arith.addf %108, %132 : vector<8x32xf32>
    %c0_55 = arith.constant 0 : index
    %c0_56 = arith.constant 0 : index
    %134 = vector.load %arg11[%c0_55, %c0_56] : memref<32x128xf32, #tpu.memory_space<vmem>>, vector<32x128xf32>
    %cst_57 = arith.constant dense<0.000000e+00> : vector<8x128xf32>
    %135 = tpu.matmul %133, %134, %cst_57 {dimension_numbers = #tpu.dot_dimension_numbers<[1], [0], [0], [1], [0, 0, 1, 1], [], []>} : vector<8x32xf32>, vector<32x128xf32>, vector<8x128xf32> -> vector<8x128xf32>
    %c0_58 = arith.constant 0 : index
    %c0_59 = arith.constant 0 : index
    %136 = vector.load %arg12[%c0_58, %c0_59] : memref<1x128xf32, #tpu.memory_space<vmem>>, vector<1x128xf32>
    %137 = vector.broadcast %136 : vector<1x128xf32> to vector<8x128xf32>
    %138 = arith.addf %135, %137 : vector<8x128xf32>
    %c0_60 = arith.constant 0 : index
    %c0_61 = arith.constant 0 : index
    %c0_62 = arith.constant 0 : index
    %139 = vector.load %arg14[%c0_60, %c0_61, %c0_62] : memref<1x8x128xf32, #tpu.memory_space<vmem>>, vector<1x8x128xf32>
    %140 = vector.shape_cast %139 : vector<1x8x128xf32> to vector<8x128xf32>
    %141 = vector.shape_cast %138 : vector<8x128xf32> to vector<1x8x128xf32>
    tpu.vector_store %arg14[%c0_60, %c0_61, %c0_62], %141 {strides = array<i32>} : memref<1x8x128xf32, #tpu.memory_space<vmem>>, vector<1x8x128xf32>,
    %142 = vector.extract_strided_slice %138 {offsets = [0, 0], sizes = [8, 32], strides = [1, 1]} : vector<8x128xf32> to vector<8x32xf32>
    %c0_63 = arith.constant 0 : index
    %c0_64 = arith.constant 0 : index
    %143 = vector.load %arg8[%c0_63, %c0_64] : memref<64x32xf32, #tpu.memory_space<vmem>>, vector<64x32xf32>
    %144 = arith.addf %100, %143 : vector<64x32xf32>
    %cst_65 = arith.constant dense<0.000000e+00> : vector<8x64xf32>
    %145 = tpu.matmul %142, %144, %cst_65 {dimension_numbers = #tpu.dot_dimension_numbers<[1], [1], [0], [0], [0, 0, 1, 0], [], []>} : vector<8x32xf32>, vector<64x32xf32>, vector<8x64xf32> -> vector<8x64xf32>
    %c0_66 = arith.constant 0 : index
    %c0_67 = arith.constant 0 : index
    %146 = vector.load %arg13[%c0_66, %c0_67] : memref<64x1024xf32, #tpu.memory_space<vmem>>, vector<64x1024xf32>
    %cst_68 = arith.constant dense<0.000000e+00> : vector<8x1024xf32>
    %147 = tpu.matmul %145, %146, %cst_68 {dimension_numbers = #tpu.dot_dimension_numbers<[1], [0], [0], [1], [0, 0, 1, 1], [], []>} : vector<8x64xf32>, vector<64x1024xf32>, vector<8x1024xf32> -> vector<8x1024xf32>
    %148 = vector.extract_strided_slice %138 {offsets = [0, 32], sizes = [8, 3], strides = [1, 1]} : vector<8x128xf32> to vector<8x3xf32>
    %cst_69 = arith.constant dense<0xFF800000> : vector<8xf32>
    %149 = vector.multi_reduction <maximumf>, %148, %cst_69 [1] : vector<8x3xf32> to vector<8xf32>
    %150 = vector.shape_cast %149 : vector<8xf32> to vector<8x1xf32>
    %151 = vector.extract_strided_slice %138 {offsets = [0, 35], sizes = [8, 1], strides = [1, 1]} : vector<8x128xf32> to vector<8x1xf32>
    %152 = arith.cmpf oge, %150, %151 : vector<8x1xf32>
    %153 = arith.extui %152 : vector<8x1xi1> to vector<8x1xi32>
    %154 = arith.sitofp %153 : vector<8x1xi32> to vector<8x1xf32>
    %155 = vector.broadcast %154 : vector<8x1xf32> to vector<8x1024xf32>
    %156 = arith.mulf %147, %155 : vector<8x1024xf32>
    %c0_70 = arith.constant 0 : index
    %c0_71 = arith.constant 0 : index
    %c0_72 = arith.constant 0 : index
    %157 = vector.load %arg15[%c0_70, %c0_71, %c0_72] : memref<1x8x1024xf32, #tpu.memory_space<vmem>>, vector<1x8x1024xf32>
    %158 = vector.shape_cast %157 : vector<1x8x1024xf32> to vector<8x1024xf32>
    %159 = vector.shape_cast %156 : vector<8x1024xf32> to vector<1x8x1024xf32>
    tpu.vector_store %arg15[%c0_70, %c0_71, %c0_72], %159 {strides = array<i32>} : memref<1x8x1024xf32, #tpu.memory_space<vmem>>, vector<1x8x1024xf32>,
    return
  }
  func.func @transform_0(%arg0: i32) -> (i32, i32, i32) {
    %c0_i32 = arith.constant 0 : i32
    %c0_i32_0 = arith.constant 0 : i32
    %c0_i32_1 = arith.constant 0 : i32
    return %arg0, %c0_i32, %c0_i32_0 : i32, i32, i32
  }
  func.func @transform_1(%arg0: i32) -> (i32, i32) {
    %c0_i32 = arith.constant 0 : i32
    %c0_i32_0 = arith.constant 0 : i32
    %c0_i32_1 = arith.constant 0 : i32
    return %c0_i32, %c0_i32_0 : i32, i32
  }
  func.func @transform_2(%arg0: i32) -> (i32, i32, i32) {
    %c0_i32 = arith.constant 0 : i32
    %c0_i32_0 = arith.constant 0 : i32
    %c0_i32_1 = arith.constant 0 : i32
    %c0_i32_2 = arith.constant 0 : i32
    return %c0_i32, %c0_i32_0, %c0_i32_1 : i32, i32, i32
  }
  func.func @transform_3(%arg0: i32) -> (i32, i32) {
    %c0_i32 = arith.constant 0 : i32
    %c0_i32_0 = arith.constant 0 : i32
    %c0_i32_1 = arith.constant 0 : i32
    return %c0_i32, %c0_i32_0 : i32, i32
  }
  func.func @transform_4(%arg0: i32) -> (i32, i32, i32) {
    %c0_i32 = arith.constant 0 : i32
    %c0_i32_0 = arith.constant 0 : i32
    %c0_i32_1 = arith.constant 0 : i32
    %c0_i32_2 = arith.constant 0 : i32
    return %c0_i32, %c0_i32_0, %c0_i32_1 : i32, i32, i32
  }
  func.func @transform_5(%arg0: i32) -> (i32, i32) {
    %c0_i32 = arith.constant 0 : i32
    %c0_i32_0 = arith.constant 0 : i32
    %c0_i32_1 = arith.constant 0 : i32
    return %c0_i32, %c0_i32_0 : i32, i32
  }
  func.func @transform_6(%arg0: i32) -> (i32, i32) {
    %c0_i32 = arith.constant 0 : i32
    %c0_i32_0 = arith.constant 0 : i32
    %c0_i32_1 = arith.constant 0 : i32
    return %c0_i32, %c0_i32_0 : i32, i32
  }
  func.func @transform_7(%arg0: i32) -> (i32, i32) {
    %c0_i32 = arith.constant 0 : i32
    %c0_i32_0 = arith.constant 0 : i32
    %c0_i32_1 = arith.constant 0 : i32
    return %c0_i32, %c0_i32_0 : i32, i32
  }
  func.func @transform_8(%arg0: i32) -> (i32, i32) {
    %c0_i32 = arith.constant 0 : i32
    %c0_i32_0 = arith.constant 0 : i32
    %c0_i32_1 = arith.constant 0 : i32
    return %c0_i32, %c0_i32_0 : i32, i32
  }
  func.func @transform_9(%arg0: i32) -> (i32, i32, i32) {
    %c0_i32 = arith.constant 0 : i32
    %c0_i32_0 = arith.constant 0 : i32
    %c0_i32_1 = arith.constant 0 : i32
    %c0_i32_2 = arith.constant 0 : i32
    return %c0_i32, %c0_i32_0, %c0_i32_1 : i32, i32, i32
  }
  func.func @transform_10(%arg0: i32) -> (i32, i32) {
    %c0_i32 = arith.constant 0 : i32
    %c0_i32_0 = arith.constant 0 : i32
    %c0_i32_1 = arith.constant 0 : i32
    return %c0_i32, %c0_i32_0 : i32, i32
  }
  func.func @transform_11(%arg0: i32) -> (i32, i32) {
    %c0_i32 = arith.constant 0 : i32
    %c0_i32_0 = arith.constant 0 : i32
    %c0_i32_1 = arith.constant 0 : i32
    return %c0_i32, %c0_i32_0 : i32, i32
  }
  func.func @transform_12(%arg0: i32) -> (i32, i32) {
    %c0_i32 = arith.constant 0 : i32
    %c0_i32_0 = arith.constant 0 : i32
    %c0_i32_1 = arith.constant 0 : i32
    return %c0_i32, %c0_i32_0 : i32, i32
  }
  func.func @transform_13(%arg0: i32) -> (i32, i32, i32) {
    %c0_i32 = arith.constant 0 : i32
    %c0_i32_0 = arith.constant 0 : i32
    %c0_i32_1 = arith.constant 0 : i32
    return %arg0, %c0_i32, %c0_i32_0 : i32, i32, i32
  }
  func.func @transform_14(%arg0: i32) -> (i32, i32, i32) {
    %c0_i32 = arith.constant 0 : i32
    %c0_i32_0 = arith.constant 0 : i32
    %c0_i32_1 = arith.constant 0 : i32
    return %arg0, %c0_i32, %c0_i32_0 : i32, i32, i32
  }
}

</mosaic_0001>

<bundles_post_ra>
// kernel: _forward_core.1
= control target key start
LH: loop header
LB: loop body
LE: loop exit
PB: predicated region body
PF: predicated region fallthrough
CT: control target
= control target key end

     0   :  { %s2399_s29 = smov 0   ;;  %s3144_s0 = inlined_call_operand.vmem [shape: f32[2,64,48], index: 0, kind: input, shape index: {}]   ;;  %s3145_s1 = inlined_call_operand.vmem [shape: f32[48,32], index: 1, kind: input, shape index: {}]   ;;  %s3146_s2 = inlined_call_operand.vmem [shape: f32[3,32,32], index: 2, kind: input, shape index: {}]   ;;  %s3147_s3 = inlined_call_operand.vmem [shape: f32[32,32], index: 3, kind: input, shape index: {}]   ;;  %s3148_s4 = inlined_call_operand.vmem [shape: f32[3,32,32], index: 4, kind: input, shape index: {}]   ;;  %s3149_s5 = inlined_call_operand.vmem [shape: f32[6,32], index: 5, kind: input, shape index: {}]   ;;  %s3150_s6 = inlined_call_operand.vmem [shape: f32[80,64], index: 6, kind: input, shape index: {}]   ;;  %s3151_s7 = inlined_call_operand.vmem [shape: f32[64,32], index: 7, kind: input, shape index: {}]   ;;  %s3152_s8 = inlined_call_operand.vmem [shape: f32[8,32], index: 8, kind: input, shape index: {}]   ;;  %s3153_s9 = inlined_call_operand.vmem [shape: f32[3,32,32], index: 9, kind: input, shape index: {}]   ;;  %s3154_s10 = inlined_call_operand.vmem [shape: f32[32,128], index: 10, kind: input, shape index: {}]   ;;  %s3155_s11 = inlined_call_operand.vmem [shape: f32[1,128], index: 11, kind: input, shape index: {}]   ;;  %s3156_s12 = inlined_call_operand.vmem [shape: f32[64,1024], index: 12, kind: input, shape index: {}]   ;;  %s3157_s13 = inlined_call_operand.vmem [shape: f32[2,8,128], index: 13, kind: output, shape index: {0}]   ;;  %s3158_s14 = inlined_call_operand.vmem [shape: f32[2,8,1024], index: 14, kind: output, shape index: {1}]  }
   0x1 LB: > { %s2088_s30 = sadd.s32 4294967295, %s2320_s29   ;;  %p2092_p0 = scmp.ge.s32.totalorder %s2320_s29, 1  ;;  %s2320_s29 = sphi %s2399_s29, %s25_s29  }
   0x2   : > { %p415_p1 = scmp.lt.s32.totalorder %s2320_s29, 3 }
   0x4   : > { %p416_p2 = pnand %p2092_p0, %p415_p1 }
   0x5   : > { %p465_p3 = scmp.lt.s32.totalorder (!%p416_p2), %s2088_s30, 1 }
   0x6   : > { %419 = sbr.rel (%p416_p2) target bundleno = 2031 (0x7ef), region = 72 }
   0xb   : > { %v517_v0 = vld [vmem:[%s3145_s1 + $0x28] sm:$0xff]  ;;  %v516_v1 = vld [vmem:[%s3145_s1 + $0x20] sm:$0xff]  ;;  %v515_v2 = vld [vmem:[%s3145_s1 + $0x18] sm:$0xff]  ;;  %s3160_s30 = smov (!%p465_p3, %s2088_s30), 1  ;;  %vm519_vm0 = vcmask 392192   ;;  %vm658_vm1 = vcmask 261120  }
   0xc   : > { %554 = vmatpush.msra.mxu0 %v517_v0  ;;  %v514_v3 = vld [vmem:[%s3145_s1 + $0x10] sm:$0xff]  ;;  %s2226_s23 = sshll.u32 %s3160_s30, 6  ;;  %v513_v4 = vld [vmem:[%s3145_s1 + $0x8] sm:$0xff]  ;;  %v512_v5 = vld [vmem:[%s3145_s1] sm:$0xff]  ;;  %vm1324_vm2 = vcmask 523264   ;;  %vm1616_vm3 = vcmask 654336  }
   0xd   : > { %s469_s28 = scalar_lea.vmem %s3144_s0, %s2226_s23  ;;  %v491_v14 = vld [vmem:[%s3146_s2 + $0x18] sm:$0xff]  ;;  %v490_v15 = vld [vmem:[%s3146_s2 + $0x10] sm:$0xff]  ;;  %v489_v16 = vld [vmem:[%s3146_s2 + $0x8] sm:$0xff]  ;;  %s2095_s21 = sshll.u32 %s3160_s30, 3  ;;  %vm1974_vm4 = vcmask 285952  }
   0xe   : > { %555 = vmatpush.msra.mxu0 %v516_v1  ;;  %v479_v6 = vld [vmem:[%s469_s28] sm:$0xff]  ;;  %v480_v7 = vld [vmem:[%s469_s28 + $0x8] sm:$0xff]  ;;  %v481_v8 = vld [vmem:[%s469_s28 + $0x10] sm:$0xff]  ;;  %695 = vmatpush.msra.mxu1 %v491_v14  ;;  %s473_s27 = scalar_lea.vmem %s3157_s13, %s2095_s21  ;;  %s478_s24 = scalar_lea.vmem %s3158_s14, %s2226_s23 }
   0xf   : > { %v482_v9 = vld [vmem:[%s469_s28 + $0x18] sm:$0xff]  ;;  %v483_v10 = vld [vmem:[%s469_s28 + $0x20] sm:$0xff]  ;;  %v484_v11 = vld [vmem:[%s469_s28 + $0x28] sm:$0xff]  ;;  %2228 = vmatpush.msra.mxu3 %v491_v14 }
  0x10   : > { %556 = vmatpush.msra.mxu0 %v515_v2  ;;  %v485_v12 = vld [vmem:[%s469_s28 + $0x30] sm:$0xff]  ;;  %v486_v13 = vld [vmem:[%s469_s28 + $0x38] sm:$0xff]  ;;  %696 = vmatpush.msra.mxu1 %v490_v15  ;;  %v488_v17 = vld [vmem:[%s3146_s2] sm:$0xff] }
  0x11   : > { %2229 = vmatpush.msra.mxu3 %v490_v15  ;;  %v2456_v18 = vld [vmem:[%s3149_s5] sm:$0x3f] }
  0x12   : > { %557 = vmatpush.msra.mxu0 %v514_v3  ;;  %697 = vmatpush.msra.mxu1 %v489_v16  ;;  %v2459_v19 = vperm.slane %v2456_v18, 0 }
  0x13   : > { %2230 = vmatpush.msra.mxu3 %v489_v16 }
  0x14   : > { %558 = vmatpush.msra.mxu0 %v513_v4  ;;  %698 = vmatpush.msra.mxu1 %v488_v17 }
  0x15   : > { %2231 = vmatpush.msra.mxu3 %v488_v17 }
  0x16   : > { %559 = vmatpush.msra.mxu0 %v512_v5 }
  0x17   : > { %2098 = vmatmul.msk.f32.vlgmr.msra.gmra.mxu0 %vm519_vm0, %v479_v6 }
  0x1f   : > { %2099 = vmatmul.msk.f32.gmra.mxu0 %vm519_vm0, %v480_v7 }
  0x27   : > { %2100 = vmatmul.msk.f32.gmra.mxu0 %vm519_vm0, %v481_v8 }
  0x2f   : > { %2101 = vmatmul.msk.f32.gmra.mxu0 %vm519_vm0, %v482_v9 }
  0x37   : > { %2102 = vmatmul.msk.f32.gmra.mxu0 %vm519_vm0, %v483_v10 }
  0x3f   : > { %2103 = vmatmul.msk.f32.gmra.mxu0 %vm519_vm0, %v484_v11 }
  0x47   : > { %2104 = vmatmul.msk.f32.gmra.mxu0 %vm519_vm0, %v485_v12 }
  0x4f   : > { %2105 = vmatmul.msk.f32.gmra.mxu0 %vm519_vm0, %v486_v13 }
  0x94   : > { %v561_v20 = vpop.f32.mrf.mxu0 }
  0x95   : > { %v562_v21 = vadd.f32 %v561_v20, %v2459_v19 }
  0x97   : > { %v585_v22 = vmul.f32 %v562_v21, %v562_v21 }
  0x99   : > { %v593_v23 = vmul.f32 %v585_v22, %v562_v21 }
  0x9b   : > { %v601_v24 = vmul.f32 0.044715, %v593_v23 }
  0x9c   : > { %v564_v25 = vpop.f32.mrf.mxu0 }
  0x9d   : > { %v565_v26 = vadd.f32 %v564_v25, %v2459_v19  ;;  %v609_v27 = vadd.f32 %v601_v24, %v562_v21 }
  0x9f   : > { %v586_v28 = vmul.f32 %v565_v26, %v565_v26  ;;  %v617_v29 = vmul.f32 0.7978846, %v609_v27 }
  0xa1   : > { %v594_v30 = vmul.f32 %v586_v28, %v565_v26  ;;  %2245 = vtanh.f32 %v617_v29 }
  0xa3   : > { %v602_v31 = vmul.f32 0.044715, %v594_v30 }
  0xa4   : > { %v567_v32 = vpop.f32.mrf.mxu0 }
  0xa5   : > { %v568_v33 = vadd.f32 %v567_v32, %v2459_v19  ;;  %v610_v34 = vadd.f32 %v602_v31, %v565_v26 }
  0xa7   : > { %v2246_v35 = vpop.eup %2245  ;;  %v587_v36 = vmul.f32 %v568_v33, %v568_v33  ;;  %v618_v37 = vmul.f32 0.7978846, %v610_v34 }
  0xa8   : > { %v633_v38 = vadd.f32 1.0, %v2246_v35 }
  0xa9   : > { %v595_v39 = vmul.f32 %v587_v36, %v568_v33  ;;  %2247 = vtanh.f32 %v618_v37 }
  0xaa   : > { %v641_v40 = vmul.f32 0.5, %v633_v38 }
  0xab   : > { %v603_v41 = vmul.f32 0.044715, %v595_v39 }
  0xac   : > { %v570_v42 = vpop.f32.mrf.mxu0  ;;  %v2464_v43 = vmul.f32 %v641_v40, %v562_v21 }
  0xad   : > { %v571_v44 = vadd.f32 %v570_v42, %v2459_v19  ;;  %v611_v45 = vadd.f32 %v603_v41, %v568_v33 }
  0xae   : > { %2106 = vmatmul.msk.f32.vlgmr.msra.gmra.mxu1 %vm658_vm1, %v2464_v43 }
  0xaf   : > { %v2248_v46 = vpop.eup %2247  ;;  %v588_v47 = vmul.f32 %v571_v44, %v571_v44  ;;  %v619_v48 = vmul.f32 0.7978846, %v611_v45 }
  0xb0   : > { %v634_v49 = vadd.f32 1.0, %v2248_v46  ;;  %v495_v46 = vld [vmem:[%s3146_s2 + $0x38] sm:$0xff] }
  0xb1   : > { %v596_v50 = vmul.f32 %v588_v47, %v571_v44  ;;  %2249 = vtanh.f32 %v619_v48  ;;  %v503_v47 = vld [vmem:[%s3148_s4 + $0x18] sm:$0xff]  ;;  %841 = vmatpush.msra.mxu2 %v495_v46  ;;  %v494_v48 = vld [vmem:[%s3146_s2 + $0x30] sm:$0xff] }
  0xb2   : > { %v642_v51 = vmul.f32 0.5, %v634_v49  ;;  %1027 = vmatpush.msrb.mxu1 %v503_v47  ;;  %v502_v49 = vld [vmem:[%s3148_s4 + $0x10] sm:$0xff] }
  0xb3   : > { %v604_v52 = vmul.f32 0.044715, %v596_v50  ;;  %842 = vmatpush.msra.mxu2 %v494_v48  ;;  %v493_v50 = vld [vmem:[%s3146_s2 + $0x28] sm:$0xff] }
  0xb4   : > { %v573_v53 = vpop.f32.mrf.mxu0  ;;  %v2469_v54 = vmul.f32 %v642_v51, %v565_v26  ;;  %1028 = vmatpush.msrb.mxu1 %v502_v49  ;;  %v501_v51 = vld [vmem:[%s3148_s4 + $0x8] sm:$0xff] }
  0xb5   : > { %v574_v55 = vadd.f32 %v573_v53, %v2459_v19  ;;  %v612_v56 = vadd.f32 %v604_v52, %v571_v44  ;;  %843 = vmatpush.msra.mxu2 %v493_v50  ;;  %v492_v52 = vld [vmem:[%s3146_s2 + $0x20] sm:$0xff] }
  0xb6   : > { %2107 = vmatmul.msk.f32.gmra.mxu1 %vm658_vm1, %v2469_v54  ;;  %v500_v53 = vld [vmem:[%s3148_s4] sm:$0xff] }
  0xb7   : > { %v2250_v57 = vpop.eup %2249  ;;  %v589_v58 = vmul.f32 %v574_v55, %v574_v55  ;;  %v620_v59 = vmul.f32 0.7978846, %v612_v56  ;;  %1029 = vmatpush.msrb.mxu1 %v501_v51  ;;  %844 = vmatpush.msra.mxu2 %v492_v52 }
  0xb8   : > { %v635_v60 = vadd.f32 1.0, %v2250_v57 }
  0xb9   : > { %v597_v61 = vmul.f32 %v589_v58, %v574_v55  ;;  %2251 = vtanh.f32 %v620_v59  ;;  %1030 = vmatpush.msrb.mxu1 %v500_v53 }
  0xba   : > { %v643_v62 = vmul.f32 0.5, %v635_v60 }
  0xbb   : > { %v605_v63 = vmul.f32 0.044715, %v597_v61 }
  0xbc   : > { %v576_v0 = vpop.f32.mrf.mxu0  ;;  %v2474_v1 = vmul.f32 %v643_v62, %v568_v33 }
  0xbd   : > { %v613_v2 = vadd.f32 %v605_v63, %v574_v55  ;;  %v577_v3 = vadd.f32 %v576_v0, %v2459_v19 }
  0xbe   : > { %2108 = vmatmul.msk.f32.gmra.mxu1 %vm658_vm1, %v2474_v1 }
  0xbf   : > { %v2252_v4 = vpop.eup %2251  ;;  %v590_v5 = vmul.f32 %v577_v3, %v577_v3  ;;  %v621_v6 = vmul.f32 0.7978846, %v613_v2 }
  0xc0   : > { %v636_v7 = vadd.f32 1.0, %v2252_v4 }
  0xc1   : > { %v598_v8 = vmul.f32 %v590_v5, %v577_v3  ;;  %2253 = vtanh.f32 %v621_v6 }
  0xc2   : > { %v644_v9 = vmul.f32 0.5, %v636_v7 }
  0xc3   : > { %v606_v10 = vmul.f32 0.044715, %v598_v8 }
  0xc4   : > { %v579_v11 = vpop.f32.mrf.mxu0  ;;  %v2479_v12 = vmul.f32 %v644_v9, %v571_v44 }
  0xc5   : > { %v614_v13 = vadd.f32 %v606_v10, %v577_v3  ;;  %v580_v14 = vadd.f32 %v579_v11, %v2459_v19 }
  0xc6   : > { %2109 = vmatmul.msk.f32.gmra.mxu1 %vm658_vm1, %v2479_v12 }
  0xc7   : > { %v2254_v15 = vpop.eup %2253  ;;  %v591_v16 = vmul.f32 %v580_v14, %v580_v14  ;;  %v622_v17 = vmul.f32 0.7978846, %v614_v13 }
  0xc8   : > { %v637_v20 = vadd.f32 1.0, %v2254_v15 }
  0xc9   : > { %v599_v21 = vmul.f32 %v591_v16, %v580_v14  ;;  %2255 = vtanh.f32 %v622_v17 }
  0xca   : > { %v645_v22 = vmul.f32 0.5, %v637_v20 }
  0xcb   : > { %v607_v23 = vmul.f32 0.044715, %v599_v21 }
  0xcc   : > { %v582_v24 = vpop.f32.mrf.mxu0  ;;  %v2484_v25 = vmul.f32 %v645_v22, %v574_v55  ;;  %v2526_v55 = vperm.slane %v2456_v18, 1 }
  0xcd   : > { %v615_v26 = vadd.f32 %v607_v23, %v580_v14  ;;  %v583_v27 = vadd.f32 %v582_v24, %v2459_v19 }
  0xce   : > { %2110 = vmatmul.msk.f32.gmra.mxu1 %vm658_vm1, %v2484_v25 }
  0xcf   : > { %v2256_v28 = vpop.eup %2255  ;;  %v592_v29 = vmul.f32 %v583_v27, %v583_v27  ;;  %v623_v30 = vmul.f32 0.7978846, %v615_v26 }
  0xd0   : > { %v638_v31 = vadd.f32 1.0, %v2256_v28 }
  0xd1   : > { %v600_v32 = vmul.f32 %v592_v29, %v583_v27  ;;  %2257 = vtanh.f32 %v623_v30 }
  0xd2   : > { %v646_v33 = vmul.f32 0.5, %v638_v31 }
  0xd3   : > { %v608_v34 = vmul.f32 0.044715, %v600_v32 }
  0xd4   : > { %v2489_v35 = vmul.f32 %v646_v33, %v577_v3 }
  0xd5   : > { %v616_v36 = vadd.f32 %v608_v34, %v583_v27 }
  0xd6   : > { %2111 = vmatmul.msk.f32.gmra.mxu1 %vm658_vm1, %v2489_v35 }
  0xd7   : > { %v2258_v37 = vpop.eup %2257  ;;  %v624_v38 = vmul.f32 0.7978846, %v616_v36 }
  0xd8   : > { %v639_v19 = vadd.f32 1.0, %v2258_v37 }
  0xd9   : > { %2259 = vtanh.f32 %v624_v38 }
  0xda   : > { %v647_v39 = vmul.f32 0.5, %v639_v19 }
  0xdc   : > { %v2493_v40 = vmul.f32 %v647_v39, %v580_v14 }
  0xde   : > { %2112 = vmatmul.msk.f32.gmra.mxu1 %vm658_vm1, %v2493_v40 }
  0xdf   : > { %v2260_v41 = vpop.eup %2259 }
  0xe0   : > { %v640_v42 = vadd.f32 1.0, %v2260_v41 }
  0xe2   : > { %v648_v44 = vmul.f32 0.5, %v640_v42 }
  0xe4   : > { %v2497_v45 = vmul.f32 %v648_v44, %v583_v27 }
  0xe6   : > { %2113 = vmatmul.msk.f32.vlgmr.msra.gmra.mxu3 %vm658_vm1, %v2497_v45 }
 0x12b   : > { %v700_v56 = vpop.f32.mrf.mxu1 }
 0x12c   : > { %v701_v57 = vadd.f32 %v700_v56, %v2526_v55 }
 0x12e   : > { %v724_v58 = vmul.f32 %v701_v57, %v701_v57 }
 0x130   : > { %v732_v59 = vmul.f32 %v724_v58, %v701_v57 }
 0x132   : > { %v740_v60 = vmul.f32 0.044715, %v732_v59 }
 0x133   : > { %v703_v61 = vpop.f32.mrf.mxu1 }
 0x134   : > { %v748_v62 = vadd.f32 %v740_v60, %v701_v57  ;;  %v704_v63 = vadd.f32 %v703_v61, %v2526_v55 }
 0x136   : > { %v756_v0 = vmul.f32 0.7978846, %v748_v62  ;;  %v725_v2 = vmul.f32 %v704_v63, %v704_v63 }
 0x138   : > { %v733_v3 = vmul.f32 %v725_v2, %v704_v63  ;;  %2261 = vtanh.f32 %v756_v0 }
 0x13a   : > { %v741_v4 = vmul.f32 0.044715, %v733_v3 }
 0x13b   : > { %v706_v5 = vpop.f32.mrf.mxu1 }
 0x13c   : > { %v749_v6 = vadd.f32 %v741_v4, %v704_v63  ;;  %v707_v7 = vadd.f32 %v706_v5, %v2526_v55 }
 0x13e   : > { %v2262_v8 = vpop.eup %2261  ;;  %v757_v9 = vmul.f32 0.7978846, %v749_v6  ;;  %v726_v10 = vmul.f32 %v707_v7, %v707_v7 }
 0x13f   : > { %v772_v11 = vadd.f32 1.0, %v2262_v8 }
 0x140   : > { %v734_v13 = vmul.f32 %v726_v10, %v707_v7  ;;  %2263 = vtanh.f32 %v757_v9 }
 0x141   : > { %v780_v14 = vmul.f32 0.5, %v772_v11 }
 0x142   : > { %v742_v15 = vmul.f32 0.044715, %v734_v13 }
 0x143   : > { %v709_v16 = vpop.f32.mrf.mxu1  ;;  %v788_v17 = vmul.f32 %v780_v14, %v701_v57 }
 0x144   : > { %v750_v20 = vadd.f32 %v742_v15, %v707_v7  ;;  %v710_v21 = vadd.f32 %v709_v16, %v2526_v55 }
 0x145   : > { %v2533_v22 = vadd.f32 %v788_v17, %v2464_v43 }
 0x146   : > { %v2264_v23 = vpop.eup %2263  ;;  %v758_v24 = vmul.f32 0.7978846, %v750_v20  ;;  %v727_v26 = vmul.f32 %v710_v21, %v710_v21 }
 0x147   : > { %2114 = vmatmul.msk.f32.vlgmr.msra.gmra.mxu2 %vm658_vm1, %v2533_v22  ;;  %2130 = vmatmul.msk.f32.vlgmr.msrb.gmra.mxu1 %vm658_vm1, %v2533_v22  ;;  %v773_v27 = vadd.f32 1.0, %v2264_v23 }
 0x148   : > { %v735_v28 = vmul.f32 %v727_v26, %v710_v21  ;;  %2265 = vtanh.f32 %v758_v24 }
 0x149   : > { %v781_v29 = vmul.f32 0.5, %v773_v27 }
 0x14a   : > { %v743_v30 = vmul.f32 0.044715, %v735_v28 }
 0x14b   : > { %v712_v31 = vpop.f32.mrf.mxu1  ;;  %v789_v32 = vmul.f32 %v781_v29, %v704_v63 }
 0x14c   : > { %v751_v33 = vadd.f32 %v743_v30, %v710_v21  ;;  %v713_v43 = vadd.f32 %v712_v31, %v2526_v55 }
 0x14d   : > { %v2541_v34 = vadd.f32 %v789_v32, %v2469_v54 }
 0x14e   : > { %v2266_v36 = vpop.eup %2265  ;;  %v759_v37 = vmul.f32 0.7978846, %v751_v33  ;;  %v728_v38 = vmul.f32 %v713_v43, %v713_v43  ;;  %v507_v33 = vld [vmem:[%s3148_s4 + $0x38] sm:$0xff] }
 0x14f   : > { %2115 = vmatmul.msk.f32.gmra.mxu2 %vm658_vm1, %v2541_v34  ;;  %2131 = vmatmul.msk.f32.gmra.mxu1 %vm658_vm1, %v2541_v34  ;;  %v774_v19 = vadd.f32 1.0, %v2266_v36  ;;  %v505_v36 = vld [vmem:[%s3148_s4 + $0x28] sm:$0xff] }
 0x150   : > { %v736_v39 = vmul.f32 %v728_v38, %v713_v43  ;;  %2267 = vtanh.f32 %v759_v37  ;;  %986 = vmatpush.msrb.mxu3 %v507_v33  ;;  %v497_v37 = vld [vmem:[%s3146_s2 + $0x48] sm:$0xff]  ;;  %v504_v38 = vld [vmem:[%s3148_s4 + $0x20] sm:$0xff] }
 0x151   : > { %v782_v41 = vmul.f32 0.5, %v774_v19  ;;  %v496_v19 = vld [vmem:[%s3146_s2 + $0x40] sm:$0xff] }
 0x152   : > { %v744_v42 = vmul.f32 0.044715, %v736_v39  ;;  %v2617_v39 = vperm.slane %v2456_v18, 2 }
 0x153   : > { %v715_v44 = vpop.f32.mrf.mxu1  ;;  %v790_v46 = vmul.f32 %v782_v41, %v707_v7 }
 0x154   : > { %v752_v47 = vadd.f32 %v744_v42, %v713_v43  ;;  %v716_v54 = vadd.f32 %v715_v44, %v2526_v55 }
 0x155   : > { %v2549_v48 = vadd.f32 %v790_v46, %v2474_v1 }
 0x156   : > { %v2268_v49 = vpop.eup %2267  ;;  %v760_v50 = vmul.f32 0.7978846, %v752_v47  ;;  %v729_v51 = vmul.f32 %v716_v54, %v716_v54 }
 0x157   : > { %2116 = vmatmul.msk.f32.gmra.mxu2 %vm658_vm1, %v2549_v48  ;;  %2132 = vmatmul.msk.f32.gmra.mxu1 %vm658_vm1, %v2549_v48  ;;  %v775_v52 = vadd.f32 1.0, %v2268_v49 }
 0x158   : > { %2269 = vtanh.f32 %v760_v50  ;;  %v737_v53 = vmul.f32 %v729_v51, %v716_v54 }
 0x159   : > { %v783_v56 = vmul.f32 0.5, %v775_v52 }
 0x15a   : > { %v745_v57 = vmul.f32 0.044715, %v737_v53 }
 0x15b   : > { %v718_v58 = vpop.f32.mrf.mxu1  ;;  %v791_v59 = vmul.f32 %v783_v56, %v710_v21 }
 0x15c   : > { %v753_v60 = vadd.f32 %v745_v57, %v716_v54  ;;  %v719_v1 = vadd.f32 %v718_v58, %v2526_v55 }
 0x15d   : > { %v2557_v61 = vadd.f32 %v791_v59, %v2479_v12 }
 0x15e   : > { %v2270_v62 = vpop.eup %2269  ;;  %v761_v63 = vmul.f32 0.7978846, %v753_v60  ;;  %v730_v0 = vmul.f32 %v719_v1, %v719_v1 }
 0x15f   : > { %2117 = vmatmul.msk.f32.gmra.mxu2 %vm658_vm1, %v2557_v61  ;;  %2133 = vmatmul.msk.f32.gmra.mxu1 %vm658_vm1, %v2557_v61  ;;  %v776_v2 = vadd.f32 1.0, %v2270_v62 }
 0x160   : > { %2271 = vtanh.f32 %v761_v63  ;;  %v738_v3 = vmul.f32 %v730_v0, %v719_v1 }
 0x161   : > { %v784_v4 = vmul.f32 0.5, %v776_v2 }
 0x162   : > { %v746_v5 = vmul.f32 0.044715, %v738_v3 }
 0x163   : > { %v792_v6 = vmul.f32 %v784_v4, %v713_v43  ;;  %v498_v43 = vld [vmem:[%s3146_s2 + $0x50] sm:$0xff] }
 0x164   : > { %v754_v7 = vadd.f32 %v746_v5, %v719_v1 }
 0x165   : > { %v2564_v8 = vadd.f32 %v792_v6, %v2484_v25 }
 0x166   : > { %v2272_v12 = vpop.eup %2271  ;;  %v762_v9 = vmul.f32 0.7978846, %v754_v7 }
 0x167   : > { %2118 = vmatmul.msk.f32.gmra.mxu2 %vm658_vm1, %v2564_v8  ;;  %2134 = vmatmul.msk.f32.gmra.mxu1 %vm658_vm1, %v2564_v8  ;;  %v777_v10 = vadd.f32 1.0, %v2272_v12 }
 0x168   : > { %2273 = vtanh.f32 %v762_v9 }
 0x169   : > { %v721_v11 = vpop.f32.mrf.mxu3  ;;  %v785_v13 = vmul.f32 0.5, %v777_v10 }
 0x16a   : > { %v722_v14 = vadd.f32 %v721_v11, %v2526_v55 }
 0x16b   : > { %v793_v15 = vmul.f32 %v785_v13, %v716_v54 }
 0x16c   : > { %v731_v16 = vmul.f32 %v722_v14, %v722_v14 }
 0x16d   : > { %v2572_v17 = vadd.f32 %v793_v15, %v2489_v35 }
 0x16e   : > { %v2274_v25 = vpop.eup %2273  ;;  %v739_v20 = vmul.f32 %v731_v16, %v722_v14 }
 0x16f   : > { %2119 = vmatmul.msk.f32.gmra.mxu2 %vm658_vm1, %v2572_v17  ;;  %2135 = vmatmul.msk.f32.gmra.mxu1 %vm658_vm1, %v2572_v17  ;;  %v778_v21 = vadd.f32 1.0, %v2274_v25 }
 0x170   : > { %v747_v23 = vmul.f32 0.044715, %v739_v20 }
 0x171   : > { %v786_v24 = vmul.f32 0.5, %v778_v21 }
 0x172   : > { %v755_v26 = vadd.f32 %v747_v23, %v722_v14 }
 0x173   : > { %v794_v27 = vmul.f32 %v786_v24, %v719_v1 }
 0x174   : > { %v763_v28 = vmul.f32 0.7978846, %v755_v26 }
 0x175   : > { %v2579_v55 = vadd.f32 %v794_v27, %v2493_v40  ;;  %v499_v40 = vld [vmem:[%s3146_s2 + $0x58] sm:$0xff] }
 0x176   : > { %2275 = vtanh.f32 %v763_v28  ;;  %1069 = vmatpush.msrb.mxu2 %v499_v40 }
 0x177   : > { %2120 = vmatmul.msk.f32.gmra.mxu2 %vm658_vm1, %v2579_v55  ;;  %2136 = vmatmul.msk.f32.gmra.mxu1 %vm658_vm1, %v2579_v55 }
 0x178   : > { %1070 = vmatpush.msrb.mxu2 %v498_v43 }
 0x17a   : > { %1071 = vmatpush.msrb.mxu2 %v497_v37 }
 0x17c   : > { %v2276_v35 = vpop.eup %2275  ;;  %1072 = vmatpush.msrb.mxu2 %v496_v19 }
 0x17d   : > { %v779_v29 = vadd.f32 1.0, %v2276_v35 }
 0x17f   : > { %v787_v30 = vmul.f32 0.5, %v779_v29 }
 0x181   : > { %v795_v31 = vmul.f32 %v787_v30, %v722_v14 }
 0x183   : > { %v2586_v32 = vadd.f32 %v795_v31, %v2497_v45  ;;  %v506_v45 = vld [vmem:[%s3148_s4 + $0x30] sm:$0xff] }
 0x184   : > { %987 = vmatpush.msrb.mxu3 %v506_v45 }
 0x185   : > { %2121 = vmatmul.msk.f32.gmra.mxu2 %vm658_vm1, %v2586_v32  ;;  %2137 = vmatmul.msk.f32.gmra.mxu1 %vm658_vm1, %v2586_v32 }
 0x186   : > { %988 = vmatpush.msrb.mxu3 %v505_v36 }
 0x188   : > { %989 = vmatpush.msrb.mxu3 %v504_v38 }
 0x1ca   : > { %v846_v41 = vpop.f32.mrf.mxu2 }
 0x1cb   : > { %v847_v42 = vadd.f32 %v846_v41, %v2617_v39 }
 0x1cd   : > { %v870_v44 = vmul.f32 %v847_v42, %v847_v42 }
 0x1cf   : > { %v878_v46 = vmul.f32 %v870_v44, %v847_v42 }
 0x1d1   : > { %v886_v47 = vmul.f32 0.044715, %v878_v46 }
 0x1d2   : > { %v849_v54 = vpop.f32.mrf.mxu2 }
 0x1d3   : > { %v894_v49 = vadd.f32 %v886_v47, %v847_v42  ;;  %v850_v50 = vadd.f32 %v849_v54, %v2617_v39 }
 0x1d5   : > { %v902_v51 = vmul.f32 0.7978846, %v894_v49  ;;  %v871_v52 = vmul.f32 %v850_v50, %v850_v50 }
 0x1d7   : > { %2277 = vtanh.f32 %v902_v51  ;;  %v879_v53 = vmul.f32 %v871_v52, %v850_v50 }
 0x1d9   : > { %v887_v56 = vmul.f32 0.044715, %v879_v53 }
 0x1da   : > { %v852_v57 = vpop.f32.mrf.mxu2 }
 0x1db   : > { %v895_v58 = vadd.f32 %v887_v56, %v850_v50  ;;  %v853_v59 = vadd.f32 %v852_v57, %v2617_v39 }
 0x1dd   : > { %v2278_v60 = vpop.eup %2277  ;;  %v903_v1 = vmul.f32 0.7978846, %v895_v58  ;;  %v872_v62 = vmul.f32 %v853_v59, %v853_v59 }
 0x1de   : > { %v918_v63 = vadd.f32 1.0, %v2278_v60 }
 0x1df   : > { %2279 = vtanh.f32 %v903_v1  ;;  %v880_v0 = vmul.f32 %v872_v62, %v853_v59 }
 0x1e0   : > { %v926_v2 = vmul.f32 0.5, %v918_v63 }
 0x1e1   : > { %v888_v3 = vmul.f32 0.044715, %v880_v0 }
 0x1e2   : > { %v934_v4 = vmul.f32 %v926_v2, %v847_v42  ;;  %v855_v5 = vpop.f32.mrf.mxu2 }
 0x1e3   : > { %v896_v6 = vadd.f32 %v888_v3, %v853_v59  ;;  %v856_v7 = vadd.f32 %v855_v5, %v2617_v39 }
 0x1e4   : > { %v2624_v12 = vadd.f32 %v934_v4, %v2533_v22 }
 0x1e5   : > { %v2280_v9 = vpop.eup %2279  ;;  %v904_v10 = vmul.f32 0.7978846, %v896_v6  ;;  %v873_v11 = vmul.f32 %v856_v7, %v856_v7 }
 0x1e6   : > { %2122 = vmatmul.msk.f32.vlgmr.msrb.gmra.mxu3 %vm658_vm1, %v2624_v12  ;;  %2138 = vmatmul.msk.f32.vlgmr.msrb.gmra.mxu2 %vm658_vm1, %v2624_v12  ;;  %v919_v13 = vadd.f32 1.0, %v2280_v9 }
 0x1e7   : > { %2281 = vtanh.f32 %v904_v10  ;;  %v881_v14 = vmul.f32 %v873_v11, %v856_v7 }
 0x1e8   : > { %v927_v15 = vmul.f32 0.5, %v919_v13 }
 0x1e9   : > { %v889_v16 = vmul.f32 0.044715, %v881_v14 }
 0x1ea   : > { %v858_v25 = vpop.f32.mrf.mxu2  ;;  %v935_v20 = vmul.f32 %v927_v15, %v850_v50 }
 0x1eb   : > { %v897_v21 = vadd.f32 %v889_v16, %v856_v7  ;;  %v859_v22 = vadd.f32 %v858_v25, %v2617_v39 }
 0x1ec   : > { %v2632_v23 = vadd.f32 %v935_v20, %v2541_v34 }
 0x1ed   : > { %v2282_v24 = vpop.eup %2281  ;;  %v905_v26 = vmul.f32 0.7978846, %v897_v21  ;;  %v874_v27 = vmul.f32 %v859_v22, %v859_v22  ;;  %v1254_v21 = vld [vmem:[%s3147_s3 + $0x18] sm:$0xff] }
 0x1ee   : > { %2123 = vmatmul.msk.f32.gmra.mxu3 %vm658_vm1, %v2632_v23  ;;  %2139 = vmatmul.msk.f32.gmra.mxu2 %vm658_vm1, %v2632_v23  ;;  %v920_v28 = vadd.f32 1.0, %v2282_v24  ;;  %v509_v24 = vld [vmem:[%s3148_s4 + $0x48] sm:$0xff] }
 0x1ef   : > { %2283 = vtanh.f32 %v905_v26  ;;  %v882_v35 = vmul.f32 %v874_v27, %v859_v22  ;;  %1268 = vmatpush.msrb.mxu0 %v1254_v21  ;;  %v1252_v26 = vld [vmem:[%s3147_s3 + $0x8] sm:$0xff]  ;;  %v508_v27 = vld [vmem:[%s3148_s4 + $0x40] sm:$0xff] }
 0x1f0   : > { %v928_v29 = vmul.f32 0.5, %v920_v28  ;;  %v1251_v28 = vld [vmem:[%s3147_s3] sm:$0xff] }
 0x1f1   : > { %v890_v30 = vmul.f32 0.044715, %v882_v35  ;;  %v2708_v35 = vperm.slane %v2456_v18, 3 }
 0x1f2   : > { %v861_v31 = vpop.f32.mrf.mxu2  ;;  %v936_v40 = vmul.f32 %v928_v29, %v853_v59 }
 0x1f3   : > { %v898_v33 = vadd.f32 %v890_v30, %v859_v22  ;;  %v862_v34 = vadd.f32 %v861_v31, %v2617_v39 }
 0x1f4   : > { %v2640_v45 = vadd.f32 %v936_v40, %v2549_v48 }
 0x1f5   : > { %v2284_v43 = vpop.eup %2283  ;;  %v906_v36 = vmul.f32 0.7978846, %v898_v33  ;;  %v875_v37 = vmul.f32 %v862_v34, %v862_v34 }
 0x1f6   : > { %2124 = vmatmul.msk.f32.gmra.mxu3 %vm658_vm1, %v2640_v45  ;;  %2140 = vmatmul.msk.f32.gmra.mxu2 %vm658_vm1, %v2640_v45  ;;  %v921_v38 = vadd.f32 1.0, %v2284_v43 }
 0x1f7   : > { %2285 = vtanh.f32 %v906_v36  ;;  %v883_v19 = vmul.f32 %v875_v37, %v862_v34 }
 0x1f8   : > { %v929_v41 = vmul.f32 0.5, %v921_v38 }
 0x1f9   : > { %v891_v42 = vmul.f32 0.044715, %v883_v19 }
 0x1fa   : > { %v864_v44 = vpop.f32.mrf.mxu2  ;;  %v937_v46 = vmul.f32 %v929_v41, %v856_v7 }
 0x1fb   : > { %v899_v47 = vadd.f32 %v891_v42, %v862_v34  ;;  %v865_v48 = vadd.f32 %v864_v44, %v2617_v39 }
 0x1fc   : > { %v2648_v54 = vadd.f32 %v937_v46, %v2557_v61 }
 0x1fd   : > { %v2286_v49 = vpop.eup %2285  ;;  %v907_v50 = vmul.f32 0.7978846, %v899_v47  ;;  %v876_v51 = vmul.f32 %v865_v48, %v865_v48 }
 0x1fe   : > { %2125 = vmatmul.msk.f32.gmra.mxu3 %vm658_vm1, %v2648_v54  ;;  %2141 = vmatmul.msk.f32.gmra.mxu2 %vm658_vm1, %v2648_v54  ;;  %v922_v52 = vadd.f32 1.0, %v2286_v49 }
 0x1ff   : > { %2287 = vtanh.f32 %v907_v50  ;;  %v884_v53 = vmul.f32 %v876_v51, %v865_v48 }
 0x200   : > { %v930_v56 = vmul.f32 0.5, %v922_v52 }
 0x201   : > { %v892_v57 = vmul.f32 0.044715, %v884_v53 }
 0x202   : > { %v938_v58 = vmul.f32 %v930_v56, %v859_v22  ;;  %v1253_v22 = vld [vmem:[%s3147_s3 + $0x10] sm:$0xff] }
 0x203   : > { %v900_v59 = vadd.f32 %v892_v57, %v865_v48  ;;  %1269 = vmatpush.msrb.mxu0 %v1253_v22 }
 0x204   : > { %v2655_v60 = vadd.f32 %v938_v58, %v2564_v8 }
 0x205   : > { %v2288_v61 = vpop.eup %2287  ;;  %v908_v1 = vmul.f32 0.7978846, %v900_v59  ;;  %1270 = vmatpush.msrb.mxu0 %v1252_v26 }
 0x206   : > { %2126 = vmatmul.msk.f32.gmra.mxu3 %vm658_vm1, %v2655_v60  ;;  %2142 = vmatmul.msk.f32.gmra.mxu2 %vm658_vm1, %v2655_v60  ;;  %v923_v62 = vadd.f32 1.0, %v2288_v61 }
 0x207   : > { %2289 = vtanh.f32 %v908_v1  ;;  %1271 = vmatpush.msrb.mxu0 %v1251_v28 }
 0x208   : > { %v867_v63 = vpop.f32.mrf.mxu2  ;;  %v931_v0 = vmul.f32 0.5, %v923_v62 }
 0x209   : > { %v868_v2 = vadd.f32 %v867_v63, %v2617_v39 }
 0x20a   : > { %v939_v3 = vmul.f32 %v931_v0, %v862_v34 }
 0x20b   : > { %v877_v4 = vmul.f32 %v868_v2, %v868_v2 }
 0x20c   : > { %v2663_v5 = vadd.f32 %v939_v3, %v2572_v17 }
 0x20d   : > { %v2290_v8 = vpop.eup %2289  ;;  %v885_v6 = vmul.f32 %v877_v4, %v868_v2 }
 0x20e   : > { %2127 = vmatmul.msk.f32.gmra.mxu3 %vm658_vm1, %v2663_v5  ;;  %2143 = vmatmul.msk.f32.gmra.mxu2 %vm658_vm1, %v2663_v5  ;;  %v924_v7 = vadd.f32 1.0, %v2290_v8 }
 0x20f   : > { %v893_v9 = vmul.f32 0.044715, %v885_v6 }
 0x210   : > { %v932_v10 = vmul.f32 0.5, %v924_v7 }
 0x211   : > { %v901_v11 = vadd.f32 %v893_v9, %v868_v2 }
 0x212   : > { %v940_v13 = vmul.f32 %v932_v10, %v865_v48 }
 0x213   : > { %v909_v14 = vmul.f32 0.7978846, %v901_v11 }
 0x214   : > { %v2670_v39 = vadd.f32 %v940_v13, %v2579_v55  ;;  %v511_v55 = vld [vmem:[%s3148_s4 + $0x58] sm:$0xff] }
 0x215   : > { %2291 = vtanh.f32 %v909_v14  ;;  %1214 = vmatpush.msra.mxu3 %v511_v55 }
 0x216   : > { %2128 = vmatmul.msk.f32.gmra.mxu3 %vm658_vm1, %v2670_v39  ;;  %2144 = vmatmul.msk.f32.gmra.mxu2 %vm658_vm1, %v2670_v39 }
 0x21b   : > { %v2292_v17 = vpop.eup %2291 }
 0x21c   : > { %v925_v15 = vadd.f32 1.0, %v2292_v17 }
 0x21e   : > { %v933_v16 = vmul.f32 0.5, %v925_v15 }
 0x220   : > { %v941_v25 = vmul.f32 %v933_v16, %v868_v2 }
 0x222   : > { %v2677_v20 = vadd.f32 %v941_v25, %v2586_v32  ;;  %v510_v32 = vld [vmem:[%s3148_s4 + $0x50] sm:$0xff] }
 0x223   : > { %1215 = vmatpush.msra.mxu3 %v510_v32 }
 0x224   : > { %2129 = vmatmul.msk.f32.gmra.mxu3 %vm658_vm1, %v2677_v20  ;;  %2145 = vmatmul.msk.f32.gmra.mxu2 %vm658_vm1, %v2677_v20 }
 0x225   : > { %1216 = vmatpush.msra.mxu3 %v509_v24 }
 0x227   : > { %1217 = vmatpush.msra.mxu3 %v508_v27 }
 0x269   : > { %v1074_v29 = vpop.f32.mrf.mxu2 }
 0x26a   : > { %v1075_v30 = vadd.f32 %v1074_v29, %v2708_v35 }
 0x26c   : > { %v1098_v31 = vmul.f32 %v1075_v30, %v1075_v30 }
 0x26e   : > { %v1106_v40 = vmul.f32 %v1098_v31, %v1075_v30 }
 0x270   : > { %v1114_v33 = vmul.f32 0.044715, %v1106_v40 }
 0x271   : > { %v1077_v34 = vpop.f32.mrf.mxu2 }
 0x272   : > { %v1122_v43 = vadd.f32 %v1114_v33, %v1075_v30  ;;  %v1078_v36 = vadd.f32 %v1077_v34, %v2708_v35 }
 0x274   : > { %v1130_v37 = vmul.f32 0.7978846, %v1122_v43  ;;  %v1099_v38 = vmul.f32 %v1078_v36, %v1078_v36 }
 0x276   : > { %2293 = vtanh.f32 %v1130_v37  ;;  %v1107_v19 = vmul.f32 %v1099_v38, %v1078_v36 }
 0x278   : > { %v1115_v41 = vmul.f32 0.044715, %v1107_v19 }
 0x279   : > { %v1080_v42 = vpop.f32.mrf.mxu2 }
 0x27a   : > { %v1123_v44 = vadd.f32 %v1115_v41, %v1078_v36  ;;  %v1081_v18 = vadd.f32 %v1080_v42, %v2708_v35 }
 0x27c   : > { %v2294_v46 = vpop.eup %2293  ;;  %v1131_v47 = vmul.f32 0.7978846, %v1123_v44  ;;  %v1100_v48 = vmul.f32 %v1081_v18, %v1081_v18 }
 0x27d   : > { %v1146_v49 = vadd.f32 1.0, %v2294_v46 }
 0x27e   : > { %2295 = vtanh.f32 %v1131_v47  ;;  %v1108_v50 = vmul.f32 %v1100_v48, %v1081_v18 }
 0x27f   : > { %v1154_v51 = vmul.f32 0.5, %v1146_v49 }
 0x280   : > { %v1116_v52 = vmul.f32 0.044715, %v1108_v50 }
 0x281   : > { %v1162_v53 = vmul.f32 %v1154_v51, %v1075_v30  ;;  %v1083_v56 = vpop.f32.mrf.mxu2 }
 0x282   : > { %v1124_v57 = vadd.f32 %v1116_v52, %v1081_v18  ;;  %v1084_v58 = vadd.f32 %v1083_v56, %v2708_v35 }
 0x283   : > { %v1170_v59 = vadd.f32 %v1162_v53, %v2624_v12 }
 0x284   : > { %v2296_v61 = vpop.eup %2295  ;;  %v1132_v1 = vmul.f32 0.7978846, %v1124_v57  ;;  %v1101_v62 = vmul.f32 %v1084_v58, %v1084_v58 }
 0x285   : > { %2146 = vmatmul.msk.f32.vlgmr.msra.gmra.mxu3 %vm658_vm1, %v1170_v59  ;;  %2154 = vmatmul.msk.f32.vlgmr.msrb.gmra.mxu0 %vm658_vm1, %v1170_v59  ;;  %v1147_v63 = vadd.f32 1.0, %v2296_v61 }
 0x286   : > { %2297 = vtanh.f32 %v1132_v1  ;;  %v1109_v0 = vmul.f32 %v1101_v62, %v1084_v58 }
 0x287   : > { %v1155_v2 = vmul.f32 0.5, %v1147_v63 }
 0x288   : > { %v1117_v3 = vmul.f32 0.044715, %v1109_v0  ;;  %v991_v0 = vpop.f32.mrf.mxu3 }
 0x289   : > { %v1086_v4 = vpop.f32.mrf.mxu2  ;;  %v1163_v8 = vmul.f32 %v1155_v2, %v1078_v36 }
 0x28a   : > { %v1125_v6 = vadd.f32 %v1117_v3, %v1084_v58  ;;  %v1087_v7 = vadd.f32 %v1086_v4, %v2708_v35 }
 0x28b   : > { %v1171_v9 = vadd.f32 %v1163_v8, %v2632_v23 }
 0x28c   : > { %v2298_v12 = vpop.eup %2297  ;;  %v1133_v10 = vmul.f32 0.7978846, %v1125_v6  ;;  %v1102_v11 = vmul.f32 %v1087_v7, %v1087_v7 }
 0x28d   : > { %2147 = vmatmul.msk.f32.gmra.mxu3 %vm658_vm1, %v1171_v9  ;;  %2155 = vmatmul.msk.f32.gmra.mxu0 %vm658_vm1, %v1171_v9  ;;  %v1148_v13 = vadd.f32 1.0, %v2298_v12 }
 0x28e   : > { %2299 = vtanh.f32 %v1133_v10  ;;  %v1110_v14 = vmul.f32 %v1102_v11, %v1087_v7  ;;  %v1032_v10 = vpop.f32.mrf.mxu1 }
 0x28f   : > { %v1156_v17 = vmul.f32 0.5, %v1148_v13  ;;  %v1033_v13 = vadd.f32 %v1032_v10, %v991_v0 }
 0x290   : > { %v1118_v15 = vmul.f32 0.044715, %v1110_v14  ;;  %v994_v8 = vpop.f32.mrf.mxu3 }
 0x291   : > { %v1089_v16 = vpop.f32.mrf.mxu2  ;;  %v1164_v25 = vmul.f32 %v1156_v17, %v1081_v18 }
 0x292   : > { %v1126_v55 = vadd.f32 %v1118_v15, %v1087_v7  ;;  %v1090_v21 = vadd.f32 %v1089_v16, %v2708_v35 }
 0x293   : > { %v1172_v32 = vadd.f32 %v1164_v25, %v2640_v45 }
 0x294   : > { %v2300_v23 = vpop.eup %2299  ;;  %v1134_v22 = vmul.f32 0.7978846, %v1126_v55  ;;  %v1103_v24 = vmul.f32 %v1090_v21, %v1090_v21 }
 0x295   : > { %2148 = vmatmul.msk.f32.gmra.mxu3 %vm658_vm1, %v1172_v32  ;;  %2156 = vmatmul.msk.f32.gmra.mxu0 %vm658_vm1, %v1172_v32  ;;  %v1149_v26 = vadd.f32 1.0, %v2300_v23 }
 0x296   : > { %2301 = vtanh.f32 %v1134_v22  ;;  %v1111_v27 = vmul.f32 %v1103_v24, %v1090_v21  ;;  %v1035_v15 = vpop.f32.mrf.mxu1 }
 0x297   : > { %v1157_v28 = vmul.f32 0.5, %v1149_v26 }
 0x298   : > { %v1119_v29 = vmul.f32 0.044715, %v1111_v27  ;;  %v997_v6 = vpop.f32.mrf.mxu3 }
 0x299   : > { %v1092_v30 = vpop.f32.mrf.mxu2  ;;  %v1165_v31 = vmul.f32 %v1157_v28, %v1084_v58 }
 0x29a   : > { %v1127_v40 = vadd.f32 %v1119_v29, %v1090_v21  ;;  %v1093_v33 = vadd.f32 %v1092_v30, %v2708_v35 }
 0x29b   : > { %v1173_v34 = vadd.f32 %v1165_v31, %v2648_v54 }
 0x29c   : > { %v2302_v45 = vpop.eup %2301  ;;  %v1135_v43 = vmul.f32 0.7978846, %v1127_v40  ;;  %v1104_v36 = vmul.f32 %v1093_v33, %v1093_v33 }
 0x29d   : > { %2149 = vmatmul.msk.f32.gmra.mxu3 %vm658_vm1, %v1173_v34  ;;  %2157 = vmatmul.msk.f32.gmra.mxu0 %vm658_vm1, %v1173_v34  ;;  %v1150_v37 = vadd.f32 1.0, %v2302_v45 }
 0x29e   : > { %2303 = vtanh.f32 %v1135_v43  ;;  %v1112_v38 = vmul.f32 %v1104_v36, %v1093_v33 }
 0x29f   : > { %v1158_v19 = vmul.f32 0.5, %v1150_v37 }
 0x2a0   : > { %v1120_v41 = vmul.f32 0.044715, %v1112_v38 }
 0x2a1   : > { %v1166_v42 = vmul.f32 %v1158_v19, %v1087_v7  ;;  %v1000_v7 = vpop.f32.mrf.mxu3 }
 0x2a2   : > { %v1128_v44 = vadd.f32 %v1120_v41, %v1093_v33  ;;  %v2313_v41 = vld [vmem:[%s3149_s5] sm:$0x3f] }
 0x2a3   : > { %v1174_v18 = vadd.f32 %v1166_v42, %v2655_v60  ;;  %v1297_v42 = vperm.slane %v2313_v41, 5 }
 0x2a4   : > { %v2304_v46 = vpop.eup %2303  ;;  %v1136_v47 = vmul.f32 0.7978846, %v1128_v44 }
 0x2a5   : > { %2150 = vmatmul.msk.f32.gmra.mxu3 %vm658_vm1, %v1174_v18  ;;  %2158 = vmatmul.msk.f32.gmra.mxu0 %vm658_vm1, %v1174_v18  ;;  %v1151_v54 = vadd.f32 1.0, %v2304_v46 }
 0x2a6   : > { %2305 = vtanh.f32 %v1136_v47 }
 0x2a7   : > { %v1095_v48 = vpop.f32.mrf.mxu2  ;;  %v1159_v49 = vmul.f32 0.5, %v1151_v54 }
 0x2a8   : > { %v1096_v50 = vadd.f32 %v1095_v48, %v2708_v35 }
 0x2a9   : > { %v1167_v51 = vmul.f32 %v1159_v49, %v1090_v21 }
 0x2aa   : > { %v1105_v52 = vmul.f32 %v1096_v50, %v1096_v50 }
 0x2ab   : > { %v1175_v53 = vadd.f32 %v1167_v51, %v2663_v5 }
 0x2ac   : > { %v2306_v56 = vpop.eup %2305  ;;  %v1113_v57 = vmul.f32 %v1105_v52, %v1096_v50 }
 0x2ad   : > { %2151 = vmatmul.msk.f32.gmra.mxu3 %vm658_vm1, %v1175_v53  ;;  %2159 = vmatmul.msk.f32.gmra.mxu0 %vm658_vm1, %v1175_v53  ;;  %v1152_v60 = vadd.f32 1.0, %v2306_v56  ;;  %v1036_v56 = vadd.f32 %v1035_v15, %v994_v8  ;;  %v1315_v15 = vld [vmem:[%s3150_s6 + $0x8] sm:$0xff] }
 0x2ae   : > { %v1121_v58 = vmul.f32 0.044715, %v1113_v57 }
 0x2af   : > { %v1160_v59 = vmul.f32 0.5, %v1152_v60 }
 0x2b0   : > { %v1129_v61 = vadd.f32 %v1121_v58, %v1096_v50 }
 0x2b1   : > { %v1168_v1 = vmul.f32 %v1160_v59, %v1093_v33 }
 0x2b2   : > { %v1137_v62 = vmul.f32 0.7978846, %v1129_v61 }
 0x2b3   : > { %v1176_v63 = vadd.f32 %v1168_v1, %v2670_v39  ;;  %v1003_v39 = vpop.f32.mrf.mxu3 }
 0x2b4   : > { %2307 = vtanh.f32 %v1137_v62 }
 0x2b5   : > { %2152 = vmatmul.msk.f32.gmra.mxu3 %vm658_vm1, %v1176_v63  ;;  %2160 = vmatmul.msk.f32.gmra.mxu0 %vm658_vm1, %v1176_v63 }
 0x2ba   : > { %v2308_v5 = vpop.eup %2307 }
 0x2bb   : > { %v1153_v35 = vadd.f32 1.0, %v2308_v5  ;;  %v1006_v9 = vpop.f32.mrf.mxu3 }
 0x2bd   : > { %v1161_v2 = vmul.f32 0.5, %v1153_v35 }
 0x2bf   : > { %v1169_v3 = vmul.f32 %v1161_v2, %v1096_v50  ;;  %v1255_v2 = vperm.slane %v2313_v41, 4  ;;  %v1321_v41 = vld [vmem:[%s3150_s6 + $0x38] sm:$0xff] }
 0x2c1   : > { %v1177_v4 = vadd.f32 %v1169_v3, %v2677_v20  ;;  %v1038_v20 = vpop.f32.mrf.mxu1 }
 0x2c2   : > { %v1039_v49 = vadd.f32 %v1038_v20, %v997_v6 }
 0x2c3   : > { %2153 = vmatmul.msk.f32.gmra.mxu3 %vm658_vm1, %v1177_v4  ;;  %2161 = vmatmul.msk.f32.gmra.mxu0 %vm658_vm1, %v1177_v4  ;;  %v1009_v12 = vpop.f32.mrf.mxu3 }
 0x2c9   : > { %v1041_v32 = vpop.f32.mrf.mxu1 }
 0x2ca   : > { %v1042_v46 = vadd.f32 %v1041_v32, %v1000_v7  ;;  %v1691_v7 = vld [vmem:[%s3151_s7 + $0x38] sm:$0xff] }
 0x2cb   : > { %v1012_v11 = vpop.f32.mrf.mxu3 }
 0x2d1   : > { %v1044_v24 = vpop.f32.mrf.mxu1 }
 0x2d2   : > { %v1045_v19 = vadd.f32 %v1044_v24, %v1003_v39  ;;  %v1687_v24 = vld [vmem:[%s3151_s7 + $0x18] sm:$0xff] }
 0x2d9   : > { %v1047_v28 = vpop.f32.mrf.mxu1 }
 0x2da   : > { %v1048_v43 = vadd.f32 %v1047_v28, %v1006_v9  ;;  %v1314_v9 = vld [vmem:[%s3150_s6] sm:$0xff] }
 0x2e1   : > { %v1050_v31 = vpop.f32.mrf.mxu1 }
 0x2e2   : > { %v1051_v34 = vadd.f32 %v1050_v31, %v1009_v12 }
 0x2e9   : > { %v1053_v45 = vpop.f32.mrf.mxu1 }
 0x2ea   : > { %v1054_v36 = vadd.f32 %v1053_v45, %v1012_v11  ;;  %v1690_v11 = vld [vmem:[%s3151_s7 + $0x30] sm:$0xff]  ;;  %v1684_v45 = vld [vmem:[%s3151_s7] sm:$0xff] }
 0x302   : > { %v2742_v16 = vpop.f32.mrf.mxu0 }
 0x308   : > { %v1219_v14 = vpop.f32.mrf.mxu3 }
 0x309   : > { %v1243_v17 = vadd.f32 %v1219_v14, %v1033_v13 }
 0x30a   : > { %v2744_v21 = vpop.f32.mrf.mxu0 }
 0x30b   : > { %v1298_v3 = vadd.f32 %v1297_v42, %v1243_v17  ;;  %v1689_v17 = vld [vmem:[%s3151_s7 + $0x28] sm:$0xff] }
 0x30d   : > { %v1306_v39 = vmax.f32 %v1298_v3, 0.0 }
 0x310   : > { %v1222_v25 = vpop.f32.mrf.mxu3 }
 0x311   : > { %v1244_v59 = vadd.f32 %v1222_v25, %v1036_v56 }
 0x312   : > { %v2746_v22 = vpop.f32.mrf.mxu0 }
 0x313   : > { %v1299_v5 = vadd.f32 %v1297_v42, %v1244_v59  ;;  %v1280_v28 = vadd.f32 %v2746_v22, %v1255_v2  ;;  %v1317_v22 = vld [vmem:[%s3150_s6 + $0x18] sm:$0xff]  ;;  %v1403_v59 = vld [vmem:[%s3153_s9] sm:$0xff] }
 0x315   : > { %v1307_v8 = vmax.f32 %v1299_v5, 0.0 }
 0x318   : > { %v1225_v55 = vpop.f32.mrf.mxu3 }
 0x319   : > { %v1245_v57 = vadd.f32 %v1225_v55, %v1039_v49  ;;  %v1688_v55 = vld [vmem:[%s3151_s7 + $0x20] sm:$0xff] }
 0x31a   : > { %v2748_v27 = vpop.f32.mrf.mxu0 }
 0x31b   : > { %v1300_v62 = vadd.f32 %v1297_v42, %v1245_v57  ;;  %v1283_v32 = vadd.f32 %v2748_v27, %v1255_v2  ;;  %v1277_v27 = vadd.f32 %v2744_v21, %v1255_v2  ;;  %v1406_v57 = vld [vmem:[%s3153_s9 + $0x18] sm:$0xff] }
 0x31c   : > { %1430 = vmatpush.msra.mxu2 %v1406_v57  ;;  %v1772_v57 = vld [vmem:[%s3156_s12 + $0xc8] sm:$0xff] }
 0x31d   : > { %v1308_v4 = vmax.f32 %v1300_v62, 0.0 }
 0x320   : > { %v1228_v23 = vpop.f32.mrf.mxu3 }
 0x321   : > { %v1246_v50 = vadd.f32 %v1228_v23, %v1042_v46  ;;  %v1413_v46 = vld [vmem:[%s3153_s9 + $0x50] sm:$0xff] }
 0x322   : > { %v2750_v30 = vpop.f32.mrf.mxu0 }
 0x323   : > { %v1301_v61 = vadd.f32 %v1297_v42, %v1246_v50  ;;  %v1286_v25 = vadd.f32 %v2750_v30, %v1255_v2  ;;  %v1686_v30 = vld [vmem:[%s3151_s7 + $0x10] sm:$0xff] }
 0x324   : > { %v1694_v31 = vadd.f32 %v1686_v30, %v1280_v28 }
 0x325   : > { %v1309_v35 = vmax.f32 %v1301_v61, 0.0  ;;  %v1696_v23 = vadd.f32 %v1688_v55, %v1286_v25  ;;  %v2883_v61 = vld [vmem:[%s3152_s8] sm:$0xff] }
 0x328   : > { %v1231_v26 = vpop.f32.mrf.mxu3 }
 0x329   : > { %v1247_v47 = vadd.f32 %v1231_v26, %v1045_v19  ;;  %v1316_v26 = vld [vmem:[%s3150_s6 + $0x10] sm:$0xff] }
 0x32a   : > { %v1288_v33 = vpop.f32.mrf.mxu0  ;;  %v1320_v19 = vld [vmem:[%s3150_s6 + $0x30] sm:$0xff] }
 0x32b   : > { %v1302_v60 = vadd.f32 %v1297_v42, %v1247_v47  ;;  %v1289_v13 = vadd.f32 %v1288_v33, %v1255_v2  ;;  %v1274_v33 = vadd.f32 %v2742_v16, %v1255_v2  ;;  %v1319_v16 = vld [vmem:[%s3150_s6 + $0x28] sm:$0xff] }
 0x32c   : > { %v1412_v47 = vld [vmem:[%s3153_s9 + $0x48] sm:$0xff] }
 0x32d   : > { %v1310_v63 = vmax.f32 %v1302_v60, 0.0  ;;  %v1697_v20 = vadd.f32 %v1689_v17, %v1289_v13  ;;  %v1692_v21 = vadd.f32 %v1684_v45, %v1274_v33  ;;  %v1405_v60 = vld [vmem:[%s3153_s9 + $0x10] sm:$0xff]  ;;  %v1653_v33 = vld [vmem:[%s3154_s10 + $0x8] sm:$0xff] }
 0x32e   : > { %1431 = vmatpush.msra.mxu2 %v1405_v60  ;;  %v1773_v60 = vld [vmem:[%s3156_s12 + $0xd0] sm:$0xff] }
 0x330   : > { %v1234_v29 = vpop.f32.mrf.mxu3 }
 0x331   : > { %v1248_v44 = vadd.f32 %v1234_v29, %v1048_v43  ;;  %v1695_v29 = vadd.f32 %v1687_v24, %v1283_v32  ;;  %v1318_v43 = vld [vmem:[%s3150_s6 + $0x20] sm:$0xff] }
 0x332   : > { %v1291_v53 = vpop.f32.mrf.mxu0 }
 0x333   : > { %v1303_v51 = vadd.f32 %v1297_v42, %v1248_v44  ;;  %v1292_v12 = vadd.f32 %v1291_v53, %v1255_v2  ;;  %v1323_v44 = vld [vmem:[%s3150_s6 + $0x48] sm:$0xff] }
 0x335   : > { %v1311_v1 = vmax.f32 %v1303_v51, 0.0  ;;  %v1698_v14 = vadd.f32 %v1690_v11, %v1292_v12 }
 0x338   : > { %v1237_v40 = vpop.f32.mrf.mxu3 }
 0x339   : > { %v1249_v37 = vadd.f32 %v1237_v40, %v1051_v34  ;;  %v1685_v40 = vld [vmem:[%s3151_s7 + $0x8] sm:$0xff] }
 0x33a   : > { %v1693_v34 = vadd.f32 %v1685_v40, %v1277_v27  ;;  %v1655_v40 = vld [vmem:[%s3154_s10 + $0x18] sm:$0xff] }
 0x33b   : > { %v1304_v54 = vadd.f32 %v1297_v42, %v1249_v37  ;;  %v1409_v37 = vld [vmem:[%s3153_s9 + $0x30] sm:$0xff] }
 0x33d   : > { %v1312_v58 = vmax.f32 %v1304_v54, 0.0  ;;  %v1407_v54 = vld [vmem:[%s3153_s9 + $0x20] sm:$0xff] }
 0x340   : > { %v1294_v0 = vpop.f32.mrf.mxu0 }
 0x341   : > { %v1295_v6 = vadd.f32 %v1294_v0, %v1255_v2 }
 0x343   : > { %v1699_v10 = vadd.f32 %v1691_v7, %v1295_v6 }
 0x346   : > { %v1240_v38 = vpop.f32.mrf.mxu3 }
 0x347   : > { %v1250_v18 = vadd.f32 %v1240_v38, %v1054_v36  ;;  %v1410_v36 = vld [vmem:[%s3153_s9 + $0x38] sm:$0xff]  ;;  %v1408_v38 = vld [vmem:[%s3153_s9 + $0x28] sm:$0xff] }
 0x348   : > { %1480 = vmatpush.msrb.mxu3 %v1410_v36 }
 0x349   : > { %v1305_v48 = vadd.f32 %v1297_v42, %v1250_v18  ;;  %v1322_v42 = vld [vmem:[%s3150_s6 + $0x40] sm:$0xff]  ;;  %v1414_v18 = vld [vmem:[%s3153_s9 + $0x58] sm:$0xff] }
 0x34a   : > { %1481 = vmatpush.msrb.mxu3 %v1409_v37  ;;  %1527 = vmatpush.msra.mxu0 %v1414_v18  ;;  %v1803_v37 = vld [vmem:[%s3156_s12 + $0x1c0] sm:$0xff]  ;;  %v1797_v18 = vld [vmem:[%s3156_s12 + $0x190] sm:$0xff] }
 0x34b   : > { %v1313_v52 = vmax.f32 %v1305_v48, 0.0  ;;  %v1411_v48 = vld [vmem:[%s3153_s9 + $0x40] sm:$0xff] }
 0x34c   : > { %1482 = vmatpush.msrb.mxu3 %v1408_v38  ;;  %1528 = vmatpush.msra.mxu0 %v1413_v46  ;;  %v1804_v38 = vld [vmem:[%s3156_s12 + $0x1c8] sm:$0xff]  ;;  %v1798_v46 = vld [vmem:[%s3156_s12 + $0x198] sm:$0xff] }
 0x34d   : > { %1363 = vmatpush.msra.mxu1 %v1313_v52 }
 0x34e   : > { %1529 = vmatpush.msra.mxu0 %v1412_v47  ;;  %1483 = vmatpush.msrb.mxu3 %v1407_v54  ;;  %v1787_v47 = vld [vmem:[%s3156_s12 + $0x140] sm:$0xff]  ;;  %v1788_v54 = vld [vmem:[%s3156_s12 + $0x148] sm:$0xff] }
 0x34f   : > { %1364 = vmatpush.msra.mxu1 %v1312_v58  ;;  %v1404_v58 = vld [vmem:[%s3153_s9 + $0x8] sm:$0xff] }
 0x350   : > { %1530 = vmatpush.msra.mxu0 %v1411_v48  ;;  %1432 = vmatpush.msra.mxu2 %v1404_v58  ;;  %v1789_v48 = vld [vmem:[%s3156_s12 + $0x150] sm:$0xff]  ;;  %v1774_v58 = vld [vmem:[%s3156_s12 + $0xd8] sm:$0xff] }
 0x351   : > { %1365 = vmatpush.msra.mxu1 %v1311_v1  ;;  %1822 = vmatpush.msra.mxu3 %v1803_v37  ;;  %v1762_v37 = vld [vmem:[%s3156_s12 + $0x78] sm:$0xff] }
 0x352   : > { %1433 = vmatpush.msra.mxu2 %v1403_v59  ;;  %1842 = vmatpush.msrb.mxu0 %v1804_v38  ;;  %v1763_v59 = vld [vmem:[%s3156_s12 + $0x80] sm:$0xff] }
 0x353   : > { %1366 = vmatpush.msra.mxu1 %v1310_v63  ;;  %2172 = vmatmul.msk.f32.vlgmr.msra.gmra.mxu2 %vm658_vm1, %v2883_v61  ;;  %v1751_v38 = vld [vmem:[%s3156_s12 + $0x20] sm:$0xff] }
 0x355   : > { %1367 = vmatpush.msra.mxu1 %v1309_v35 }
 0x357   : > { %1368 = vmatpush.msra.mxu1 %v1308_v4 }
 0x359   : > { %1369 = vmatpush.msra.mxu1 %v1307_v8 }
 0x35b   : > { %1370 = vmatpush.msra.mxu1 %v1306_v39 }
 0x35c   : > { %2162 = vmatmul.msk.f32.vlgmr.msra.gmra.mxu1 %vm1324_vm2, %v1314_v9 }
 0x35d   : > { %2206 = vmatpush.xpose.msk.msrb.mxu1 %vm658_vm1, %v1699_v10 }
 0x361   : > { %2207 = vmatpush.xpose.msk.msrb.mxu1 %vm658_vm1, %v1698_v14 }
 0x364   : > { %2163 = vmatmul.msk.f32.gmra.mxu1 %vm1324_vm2, %v1315_v15 }
 0x365   : > { %2208 = vmatpush.xpose.msk.msrb.mxu1 %vm658_vm1, %v1697_v20 }
 0x369   : > { %2209 = vmatpush.xpose.msk.msrb.mxu1 %vm658_vm1, %v1696_v23 }
 0x36c   : > { %2164 = vmatmul.msk.f32.gmra.mxu1 %vm1324_vm2, %v1316_v26 }
 0x36d   : > { %2210 = vmatpush.xpose.msk.msrb.mxu1 %vm658_vm1, %v1695_v29 }
 0x371   : > { %2211 = vmatpush.xpose.msk.msrb.mxu1 %vm658_vm1, %v1694_v31 }
 0x374   : > { %2165 = vmatmul.msk.f32.gmra.mxu1 %vm1324_vm2, %v1317_v22  ;;  %v1654_v22 = vld [vmem:[%s3154_s10 + $0x10] sm:$0xff] }
 0x375   : > { %2212 = vmatpush.xpose.msk.msrb.mxu1 %vm658_vm1, %v1693_v34  ;;  %v1652_v34 = vld [vmem:[%s3154_s10] sm:$0xff] }
 0x379   : > { %2213 = vmatpush.xpose.msk.msrb.mxu1 %vm658_vm1, %v1692_v21 }
 0x37c   : > { %2166 = vmatmul.msk.f32.gmra.mxu1 %vm1324_vm2, %v1318_v43 }
 0x384   : > { %2167 = vmatmul.msk.f32.gmra.mxu1 %vm1324_vm2, %v1319_v16 }
 0x38c   : > { %2168 = vmatmul.msk.f32.gmra.mxu1 %vm1324_vm2, %v1320_v19  ;;  %v1805_v19 = vld [vmem:[%s3156_s12 + $0x1d0] sm:$0xff] }
 0x394   : > { %2169 = vmatmul.msk.f32.gmra.mxu1 %vm1324_vm2, %v1321_v41  ;;  %v1806_v41 = vld [vmem:[%s3156_s12 + $0x1d8] sm:$0xff] }
 0x395   : > { %1882 = vmatpush.msra.mxu1 %v1806_v41  ;;  %v1753_v41 = vld [vmem:[%s3156_s12 + $0x30] sm:$0xff] }
 0x397   : > { %1883 = vmatpush.msra.mxu1 %v1798_v46 }
 0x39c   : > { %2170 = vmatmul.msk.f32.gmra.mxu1 %vm1324_vm2, %v1322_v42  ;;  %v1795_v42 = vld [vmem:[%s3156_s12 + $0x180] sm:$0xff] }
 0x39d   : > { %1823 = vmatpush.msra.mxu3 %v1795_v42  ;;  %v1754_v42 = vld [vmem:[%s3156_s12 + $0x38] sm:$0xff] }
 0x39f   : > { %1824 = vmatpush.msra.mxu3 %v1787_v47 }
 0x3a4   : > { %2171 = vmatmul.msk.f32.gmra.mxu1 %vm1324_vm2, %v1323_v44  ;;  %v1796_v44 = vld [vmem:[%s3156_s12 + $0x188] sm:$0xff] }
 0x3a5   : > { %1843 = vmatpush.msrb.mxu0 %v1796_v44 }
 0x3a7   : > { %1844 = vmatpush.msrb.mxu0 %v1788_v54 }
 0x3d6   : > { %v1435_v32 = vpop.f32.mrf.mxu2 }
 0x3d9   : > { %v1372_v49 = vpop.f32.mrf.mxu1 }
 0x3da   : > { %2173 = vmatmul.msk.f32.vlgmr.msrb.gmra.mxu3 %vm658_vm1, %v1372_v49  ;;  %2183 = vmatmul.msk.f32.vlgmr.msra.gmra.mxu0 %vm658_vm1, %v1372_v49  ;;  %v1790_v49 = vld [vmem:[%s3156_s12 + $0x158] sm:$0xff] }
 0x3db   : > { %1884 = vmatpush.msra.mxu1 %v1790_v49 }
 0x3e1   : > { %v1375_v50 = vpop.f32.mrf.mxu1 }
 0x3e2   : > { %2174 = vmatmul.msk.f32.gmra.mxu3 %vm658_vm1, %v1375_v50  ;;  %2184 = vmatmul.msk.f32.gmra.mxu0 %vm658_vm1, %v1375_v50  ;;  %v1779_v50 = vld [vmem:[%s3156_s12 + $0x100] sm:$0xff] }
 0x3e3   : > { %1825 = vmatpush.msra.mxu3 %v1779_v50 }
 0x3e9   : > { %v1378_v51 = vpop.f32.mrf.mxu1 }
 0x3ea   : > { %2175 = vmatmul.msk.f32.gmra.mxu3 %vm658_vm1, %v1378_v51  ;;  %2185 = vmatmul.msk.f32.gmra.mxu0 %vm658_vm1, %v1378_v51  ;;  %v1780_v51 = vld [vmem:[%s3156_s12 + $0x108] sm:$0xff] }
 0x3eb   : > { %1845 = vmatpush.msrb.mxu0 %v1780_v51 }
 0x3ed   : > { %1846 = vmatpush.msrb.mxu0 %v1772_v57 }
 0x3f1   : > { %v1381_v52 = vpop.f32.mrf.mxu1 }
 0x3f2   : > { %2176 = vmatmul.msk.f32.gmra.mxu3 %vm658_vm1, %v1381_v52  ;;  %2186 = vmatmul.msk.f32.gmra.mxu0 %vm658_vm1, %v1381_v52  ;;  %v1781_v52 = vld [vmem:[%s3156_s12 + $0x110] sm:$0xff] }
 0x3f9   : > { %v1384_v53 = vpop.f32.mrf.mxu1 }
 0x3fa   : > { %2177 = vmatmul.msk.f32.gmra.mxu3 %vm658_vm1, %v1384_v53  ;;  %2187 = vmatmul.msk.f32.gmra.mxu0 %vm658_vm1, %v1384_v53  ;;  %v1782_v53 = vld [vmem:[%s3156_s12 + $0x118] sm:$0xff] }
 0x3fb   : > { %1885 = vmatpush.msra.mxu1 %v1782_v53 }
 0x3fd   : > { %1886 = vmatpush.msra.mxu1 %v1774_v58 }
 0x401   : > { %v1387_v56 = vpop.f32.mrf.mxu1 }
 0x402   : > { %2178 = vmatmul.msk.f32.gmra.mxu3 %vm658_vm1, %v1387_v56  ;;  %2188 = vmatmul.msk.f32.gmra.mxu0 %vm658_vm1, %v1387_v56  ;;  %v1771_v56 = vld [vmem:[%s3156_s12 + $0xc0] sm:$0xff] }
 0x403   : > { %1826 = vmatpush.msra.mxu3 %v1771_v56 }
 0x405   : > { %1827 = vmatpush.msra.mxu3 %v1763_v59 }
 0x409   : > { %v1390_v1 = vpop.f32.mrf.mxu1 }
 0x40a   : > { %2179 = vmatmul.msk.f32.gmra.mxu3 %vm658_vm1, %v1390_v1  ;;  %2189 = vmatmul.msk.f32.gmra.mxu0 %vm658_vm1, %v1390_v1  ;;  %v1765_v1 = vld [vmem:[%s3156_s12 + $0x90] sm:$0xff] }
 0x411   : > { %v1393_v62 = vpop.f32.mrf.mxu1 }
 0x412   : > { %2180 = vmatmul.msk.f32.gmra.mxu3 %vm658_vm1, %v1393_v62  ;;  %2190 = vmatmul.msk.f32.gmra.mxu0 %vm658_vm1, %v1393_v62  ;;  %v1766_v62 = vld [vmem:[%s3156_s12 + $0x98] sm:$0xff] }
 0x413   : > { %1887 = vmatpush.msra.mxu1 %v1766_v62 }
 0x419   : > { %v1396_v63 = vpop.f32.mrf.mxu1 }
 0x41a   : > { %2181 = vmatmul.msk.f32.gmra.mxu3 %vm658_vm1, %v1396_v63  ;;  %2191 = vmatmul.msk.f32.gmra.mxu0 %vm658_vm1, %v1396_v63  ;;  %v1755_v63 = vld [vmem:[%s3156_s12 + $0x40] sm:$0xff] }
 0x41b   : > { %1828 = vmatpush.msra.mxu3 %v1755_v63 }
 0x421   : > { %v1399_v5 = vpop.f32.mrf.mxu1 }
 0x422   : > { %2182 = vmatmul.msk.f32.gmra.mxu3 %vm658_vm1, %v1399_v5  ;;  %2192 = vmatmul.msk.f32.gmra.mxu0 %vm658_vm1, %v1399_v5  ;;  %v1756_v5 = vld [vmem:[%s3156_s12 + $0x48] sm:$0xff] }
 0x457   : > { %v1532_v3 = vpop.f32.mrf.mxu0 }
 0x45d   : > { %v1485_v35 = vpop.f32.mrf.mxu3 }
 0x45f   : > { %v1535_v8 = vpop.f32.mrf.mxu0 }
 0x465   : > { %v1488_v0 = vpop.f32.mrf.mxu3 }
 0x467   : > { %v1538_v7 = vpop.f32.mrf.mxu0 }
 0x46d   : > { %v1491_v2 = vpop.f32.mrf.mxu3 }
 0x46f   : > { %v1541_v12 = vpop.f32.mrf.mxu0 }
 0x475   : > { %v1494_v4 = vpop.f32.mrf.mxu3 }
 0x477   : > { %v1544_v11 = vpop.f32.mrf.mxu0 }
 0x47d   : > { %v1497_v6 = vpop.f32.mrf.mxu3 }
 0x47f   : > { %v1547_v14 = vpop.f32.mrf.mxu0 }
 0x485   : > { %v1500_v39 = vpop.f32.mrf.mxu3 }
 0x487   : > { %v1550_v15 = vpop.f32.mrf.mxu0 }
 0x48d   : > { %v1503_v9 = vpop.f32.mrf.mxu3 }
 0x48f   : > { %v1553_v25 = vpop.f32.mrf.mxu0 }
 0x495   : > { %v1506_v10 = vpop.f32.mrf.mxu3 }
 0x497   : > { %v1556_v20 = vpop.f32.mrf.mxu0 }
 0x49d   : > { %v1509_v13 = vpop.f32.mrf.mxu3 }
 0x49f   : > { %v1559_v55 = vpop.f32.mrf.mxu0 }
 0x4a5   : > { %v1512_v17 = vpop.f32.mrf.mxu3 }
 0x4a6   : > { %2193 = vmatpush.xpose.msk.msrb.mxu2 %vm658_vm1, %v1512_v17  ;;  %v1799_v17 = vld [vmem:[%s3156_s12 + $0x1a0] sm:$0xff] }
 0x4aa   : > { %2194 = vmatpush.xpose.msk.msrb.mxu2 %vm658_vm1, %v1509_v13  ;;  %v1809_v13 = vld [vmem:[%s3156_s12 + $0x1f0] sm:$0xff] }
 0x4ae   : > { %2195 = vmatpush.xpose.msk.msrb.mxu2 %vm658_vm1, %v1506_v10  ;;  %v1807_v10 = vld [vmem:[%s3156_s12 + $0x1e0] sm:$0xff] }
 0x4b2   : > { %2196 = vmatpush.xpose.msk.msrb.mxu2 %vm658_vm1, %v1503_v9  ;;  %v2322_v9 = vmov 35  }
 0x4b3   : > { %2242 = vset.pattern.permute.xlu1 %v2322_v9  ;;  %2243 = vset.pattern.permute.xlu0 %v2322_v9 }
 0x4b6   : > { %2197 = vmatpush.xpose.msk.msrb.mxu2 %vm658_vm1, %v1500_v39  ;;  %v1749_v39 = vld [vmem:[%s3156_s12 + $0x10] sm:$0xff] }
 0x4ba   : > { %2198 = vmatpush.xpose.msk.msrb.mxu2 %vm658_vm1, %v1497_v6  ;;  %v1747_v6 = vld [vmem:[%s3156_s12] sm:$0xff] }
 0x4bb   : > { %1829 = vmatpush.msra.mxu3 %v1747_v6 }
 0x4bd   : > { %1902 = vmatpush.msrb.mxu3 %v1807_v10 }
 0x4be   : > { %2199 = vmatpush.xpose.msk.msrb.mxu2 %vm658_vm1, %v1494_v4 }
 0x4bf   : > { %1903 = vmatpush.msrb.mxu3 %v1799_v17 }
 0x4c2   : > { %2200 = vmatpush.xpose.msk.msrb.mxu2 %vm658_vm1, %v1491_v2  ;;  %v2244_v2 = vld [vmem:[%s3155_s11] ss:$0 sm:$0xff] }
 0x4c6   : > { %2201 = vmatpush.xpose.msk.msrb.mxu2 %vm658_vm1, %v1488_v0  ;;  %v1758_v0 = vld [vmem:[%s3156_s12 + $0x58] sm:$0xff] }
 0x4c7   : > { %1888 = vmatpush.msra.mxu1 %v1758_v0 }
 0x4ca   : > { %2202 = vmatpush.xpose.msk.msrb.mxu2 %vm658_vm1, %v1485_v35  ;;  %v1757_v35 = vld [vmem:[%s3156_s12 + $0x50] sm:$0xff] }
 0x4cd   : > { %2203 = vmatmul.msk.f32.vlgmr.msrb.gmra.mxu2 %vm658_vm1, %v1435_v32  ;;  %v1792_v32 = vld [vmem:[%s3156_s12 + $0x168] sm:$0xff] }
 0x4ce   : > { %1636 = vmatpush.msra.mxu2 %v1559_v55  ;;  %v1791_v55 = vld [vmem:[%s3156_s12 + $0x160] sm:$0xff] }
 0x4cf   : > { %1904 = vmatpush.msrb.mxu3 %v1791_v55 }
 0x4d0   : > { %1637 = vmatpush.msra.mxu2 %v1556_v20  ;;  %v1802_v20 = vld [vmem:[%s3156_s12 + $0x1b8] sm:$0xff] }
 0x4d2   : > { %1638 = vmatpush.msra.mxu2 %v1553_v25  ;;  %v1801_v25 = vld [vmem:[%s3156_s12 + $0x1b0] sm:$0xff] }
 0x4d4   : > { %1639 = vmatpush.msra.mxu2 %v1550_v15  ;;  %v1800_v15 = vld [vmem:[%s3156_s12 + $0x1a8] sm:$0xff] }
 0x4d6   : > { %1640 = vmatpush.msra.mxu2 %v1547_v14  ;;  %v1810_v14 = vld [vmem:[%s3156_s12 + $0x1f8] sm:$0xff] }
 0x4d8   : > { %1641 = vmatpush.msra.mxu2 %v1544_v11  ;;  %v1808_v11 = vld [vmem:[%s3156_s12 + $0x1e8] sm:$0xff] }
 0x4da   : > { %1642 = vmatpush.msra.mxu2 %v1541_v12  ;;  %v1750_v12 = vld [vmem:[%s3156_s12 + $0x18] sm:$0xff] }
 0x4db   : > { %1889 = vmatpush.msra.mxu1 %v1750_v12 }
 0x4dc   : > { %1643 = vmatpush.msra.mxu2 %v1538_v7  ;;  %v1748_v7 = vld [vmem:[%s3156_s12 + $0x8] sm:$0xff] }
 0x4de   : > { %1644 = vmatpush.msra.mxu2 %v1535_v8 }
 0x4e0   : > { %1645 = vmatpush.msra.mxu2 %v1532_v3 }
 0x4e2   : > { %1675 = vmatpush.msrb.mxu2 %v1655_v40  ;;  %v1777_v40 = vld [vmem:[%s3156_s12 + $0xf0] sm:$0xff] }
 0x4e4   : > { %1676 = vmatpush.msrb.mxu2 %v1654_v22  ;;  %v1778_v22 = vld [vmem:[%s3156_s12 + $0xf8] sm:$0xff] }
 0x4e6   : > { %1677 = vmatpush.msrb.mxu2 %v1653_v33  ;;  %v1767_v33 = vld [vmem:[%s3156_s12 + $0xa0] sm:$0xff] }
 0x4e8   : > { %1678 = vmatpush.msrb.mxu2 %v1652_v34  ;;  %v1768_v34 = vld [vmem:[%s3156_s12 + $0xa8] sm:$0xff] }
 0x550   : > { %v1612_v23 = vpop.f32.mrf.mxu2 }
 0x551   : > { %v1615_v24 = vmul.f32 0.17677669, %v1612_v23  ;;  %v1793_v23 = vld [vmem:[%s3156_s12 + $0x170] sm:$0xff] }
 0x553   : > { %v1617_v26 = vsel %vm1616_vm3, %v1615_v24, -inf }
 0x554   : > { %1618 = vmax.xlane.f32.xlu0 %v1617_v26  ;;  %v1783_v26 = vld [vmem:[%s3156_s12 + $0x120] sm:$0xff] }
 0x555   : > { %1905 = vmatpush.msrb.mxu3 %v1783_v26 }
 0x5c7   : > { %v1619_v28 = vpop.xlane.xlu0 %1618 }
 0x5c8   : > { %v1620_v29 = vsub.f32 %v1615_v24, %v1619_v28  ;;  %v1794_v24 = vld [vmem:[%s3156_s12 + $0x178] sm:$0xff]  ;;  %v1784_v28 = vld [vmem:[%s3156_s12 + $0x128] sm:$0xff] }
 0x5ca   : > { %v1621_v30 = vmul.f32 1.442695, %v1620_v29  ;;  %v1785_v29 = vld [vmem:[%s3156_s12 + $0x130] sm:$0xff] }
 0x5cc   : > { %2309 = vpow2.f32 %v1621_v30  ;;  %v1786_v30 = vld [vmem:[%s3156_s12 + $0x138] sm:$0xff] }
 0x5d2   : > { %v2310_v27 = vpop.eup %2309 }
 0x5d3   : > { %2204 = vmatmul.msk.f32.vlgmr.msra.gmra.mxu2 %vm1616_vm3, %v2310_v27  ;;  %v1623_v31 = vsel %vm1616_vm3, %v2310_v27, 0.0  ;;  %v1775_v27 = vld [vmem:[%s3156_s12 + $0xe0] sm:$0xff] }
 0x5d4   : > { %1624 = vadd.xlane.f32.xlu0 %v1623_v31  ;;  %1862 = vmatpush.msra.mxu2 %v1805_v19  ;;  %v1776_v31 = vld [vmem:[%s3156_s12 + $0xe8] sm:$0xff] }
 0x5d5   : > { %1906 = vmatpush.msrb.mxu3 %v1775_v27  ;;  %v1752_v19 = vld [vmem:[%s3156_s12 + $0x28] sm:$0xff] }
 0x5d6   : > { %1863 = vmatpush.msra.mxu2 %v1797_v18  ;;  %v2323_v18 = vmov 0.0  }
 0x5d7   : > { %1907 = vmatpush.msrb.mxu3 %v1767_v33 }
 0x5d8   : > { %1864 = vmatpush.msra.mxu2 %v1789_v48 }
 0x5da   : > { %1865 = vmatpush.msra.mxu2 %v1781_v52 }
 0x5dc   : > { %1866 = vmatpush.msra.mxu2 %v1773_v60 }
 0x5de   : > { %1867 = vmatpush.msra.mxu2 %v1765_v1 }
 0x5e0   : > { %1868 = vmatpush.msra.mxu2 %v1757_v35 }
 0x5e2   : > { %1869 = vmatpush.msra.mxu2 %v1749_v39 }
 0x647   : > { %v1625_v45 = vpop.xlane.xlu0 %1624 }
 0x648   : > { %2311 = vrcp.f32 %v1625_v45  ;;  %v1769_v45 = vld [vmem:[%s3156_s12 + $0xb0] sm:$0xff] }
 0x64e   : > { %v2312_v21 = vpop.eup %2311 }
 0x656   : > { %v1647_v43 = vpop.f32.mrf.mxu2 }
 0x657   : > { %v1650_v16 = vmul.f32 %v2312_v21, %v1647_v43  ;;  %v1770_v21 = vld [vmem:[%s3156_s12 + $0xb8] sm:$0xff]  ;;  %v1759_v43 = vld [vmem:[%s3156_s12 + $0x60] sm:$0xff] }
 0x658   : > { %1908 = vmatpush.msrb.mxu3 %v1759_v43 }
 0x659   : > { %v1651_v36 = vadd.f32 %v1650_v16, %v2883_v61  ;;  %v1764_v61 = vld [vmem:[%s3156_s12 + $0x88] sm:$0xff] }
 0x65a   : > { %1847 = vmatpush.msrb.mxu0 %v1764_v61  ;;  %v1760_v16 = vld [vmem:[%s3156_s12 + $0x68] sm:$0xff]  ;;  %1909 = vmatpush.msrb.mxu3 %v1751_v38 }
 0x65b   : > { %2205 = vmatmul.msk.f32.vlgmr.msrb.gmra.mxu2 %vm658_vm1, %v1651_v36  ;;  %v1761_v36 = vld [vmem:[%s3156_s12 + $0x70] sm:$0xff] }
 0x65c   : > { %1848 = vmatpush.msrb.mxu0 %v1756_v5  ;;  %1942 = vmatpush.msrb.mxu2 %v1809_v13 }
 0x65e   : > { %1849 = vmatpush.msrb.mxu0 %v1748_v7  ;;  %1943 = vmatpush.msrb.mxu2 %v1801_v25 }
 0x660   : > { %1922 = vmatpush.msra.mxu0 %v1808_v11  ;;  %1944 = vmatpush.msrb.mxu2 %v1793_v23 }
 0x662   : > { %1923 = vmatpush.msra.mxu0 %v1800_v15  ;;  %1945 = vmatpush.msrb.mxu2 %v1785_v29 }
 0x664   : > { %1924 = vmatpush.msra.mxu0 %v1792_v32  ;;  %1946 = vmatpush.msrb.mxu2 %v1777_v40 }
 0x666   : > { %1925 = vmatpush.msra.mxu0 %v1784_v28  ;;  %1947 = vmatpush.msrb.mxu2 %v1769_v45 }
 0x668   : > { %1926 = vmatpush.msra.mxu0 %v1776_v31  ;;  %1948 = vmatpush.msrb.mxu2 %v1761_v36 }
 0x66a   : > { %1927 = vmatpush.msra.mxu0 %v1768_v34  ;;  %1949 = vmatpush.msrb.mxu2 %v1753_v41 }
 0x66c   : > { %1928 = vmatpush.msra.mxu0 %v1760_v16 }
 0x66e   : > { %1929 = vmatpush.msra.mxu0 %v1752_v19 }
 0x6de   : > { %v1680_v3 = vpop.f32.mrf.mxu2 }
 0x6df   : > { %v3011_v4 = vadd.f32 %v2244_v2, %v1680_v3 }
 0x6e1   : > { %1683 = vst [vmem:[%s473_s27] sm:$0xff] %v3011_v4  ;;  %2214 = vmatmul.msk.f32.vlgmr.msrb.gmra.mxu1 %vm658_vm1, %v3011_v4  ;;  %v1975_v8 = vsel %vm1974_vm4, %v3011_v4, -inf }
 0x6e2   : > { %1976 = vmax.xlane.f32.xlu1 %v1975_v8  ;;  %1962 = vmatpush.msrb.mxu1 %v1810_v14 }
 0x6e4   : > { %1963 = vmatpush.msrb.mxu1 %v1802_v20 }
 0x6e6   : > { %1964 = vmatpush.msrb.mxu1 %v1794_v24 }
 0x6e8   : > { %1965 = vmatpush.msrb.mxu1 %v1786_v30 }
 0x6ea   : > { %1966 = vmatpush.msrb.mxu1 %v1778_v22 }
 0x6ec   : > { %1967 = vmatpush.msrb.mxu1 %v1770_v21 }
 0x6ee   : > { %1968 = vmatpush.msrb.mxu1 %v1762_v37 }
 0x6f0   : > { %1969 = vmatpush.msrb.mxu1 %v1754_v42 }
 0x755   : > { %v1977_v44 = vpop.xlane.xlu1 %1976 }
 0x756   : > { %vm1978_vm5 = vcmp.ge.f32.partialorder %v1977_v44, %v3011_v4 }
 0x757   : > { %v2223_v46 = vsel %vm1978_vm5, 1.0, %v2323_v18 }
 0x758   : > { %1983 = vperm.xlu1 %2242, %v2223_v46  }
 0x75e   : > { %v1744_v47 = vpop.f32.mrf.mxu1 }
 0x75f   : > { %2215 = vmatmul.msk.f32.vlgmr.msra.gmra.mxu3 %vm1324_vm2, %v1744_v47  ;;  %2216 = vmatmul.msk.f32.vlgmr.msrb.gmra.mxu0 %vm1324_vm2, %v1744_v47 }
 0x760   : > { %2217 = vmatmul.msk.f32.vlgmr.msra.gmra.mxu2 %vm1324_vm2, %v1744_v47  ;;  %2218 = vmatmul.msk.f32.vlgmr.msra.gmra.mxu1 %vm1324_vm2, %v1744_v47 }
 0x767   : > { %2219 = vmatmul.msk.f32.vlgmr.msrb.gmra.mxu3 %vm1324_vm2, %v1744_v47  ;;  %2220 = vmatmul.msk.f32.vlgmr.msra.gmra.mxu0 %vm1324_vm2, %v1744_v47 }
 0x768   : > { %2221 = vmatmul.msk.f32.vlgmr.msrb.gmra.mxu2 %vm1324_vm2, %v1744_v47  ;;  %2222 = vmatmul.msk.f32.vlgmr.msrb.gmra.mxu1 %vm1324_vm2, %v1744_v47 }
 0x7ca   : > { %v1984_v54 = vpop.permute.xlu1 %1983 }
 0x7dc   : > { %v1851_v48 = vpop.f32.mrf.mxu0 }
 0x7dd   : > { %v1987_v49 = vmul.f32 %v1984_v54, %v1851_v48  ;;  %v1891_v50 = vpop.f32.mrf.mxu1 }
 0x7de   : > { %v1989_v51 = vmul.f32 %v1984_v54, %v1891_v50 }
 0x7df   : > { %1995 = vst [vmem:[%s478_s24 + $0x8] sm:$0xff] %v1987_v49 }
 0x7e0   : > { %1997 = vst [vmem:[%s478_s24 + $0x18] sm:$0xff] %v1989_v51 }
 0x7e2   : > { %v1831_v52 = vpop.f32.mrf.mxu3 }
 0x7e3   : > { %v1986_v53 = vmul.f32 %v1984_v54, %v1831_v52  ;;  %v1871_v56 = vpop.f32.mrf.mxu2 }
 0x7e4   : > { %v1988_v57 = vmul.f32 %v1984_v54, %v1871_v56  ;;  %v1931_v60 = vpop.f32.mrf.mxu0 }
 0x7e5   : > { %1994 = vst [vmem:[%s478_s24] sm:$0xff] %v1986_v53  ;;  %v1991_v58 = vmul.f32 %v1984_v54, %v1931_v60  ;;  %v1971_v59 = vpop.f32.mrf.mxu1 }
 0x7e6   : > { %1996 = vst [vmem:[%s478_s24 + $0x10] sm:$0xff] %v1988_v57  ;;  %v1993_v61 = vmul.f32 %v1984_v54, %v1971_v59 }
 0x7e7   : > { %1999 = vst [vmem:[%s478_s24 + $0x28] sm:$0xff] %v1991_v58 }
 0x7e8   : > { %2001 = vst [vmem:[%s478_s24 + $0x38] sm:$0xff] %v1993_v61 }
 0x7ea   : > { %v1911_v1 = vpop.f32.mrf.mxu3 }
 0x7eb   : > { %v1990_v62 = vmul.f32 %v1984_v54, %v1911_v1  ;;  %v1951_v63 = vpop.f32.mrf.mxu2 }
 0x7ec   : > { %v1992_v5 = vmul.f32 %v1984_v54, %v1951_v63 }
 0x7ed   : > { %1998 = vst [vmem:[%s478_s24 + $0x20] sm:$0xff] %v1990_v62 }
 0x7ee   : > { %2000 = vst [vmem:[%s478_s24 + $0x30] sm:$0xff] %v1992_v5 }
 0x7ef PF: > { %s25_s29 = sadd.s32 1, %s2320_s29  }
 0x7f0   : > { %p22_p4 = scmp.ge.s32.totalorder %s25_s29, 4  }
 0x7f2   :  { %24 = sbr.rel (!%p22_p4) target bundleno = 1 (0x1), region = 114 }

</bundles_post_ra>
